<compile_context>
chip_gen: v6e
topology: v6e:2x2x1
jax: 0.10.0
libtpu: 0.0.40
codegen_flags: <defaults>
</compile_context>

<pallas_src>
import math

import jax
import jax.numpy as jnp
from jax.experimental import pallas as pl
from jax.experimental.pallas import tpu as pltpu

# ---------------- synthetic "config" (small, self-consistent) ----------------
VOCAB = 100
HIDDEN = 32
N_HEADS = 4
HEAD_DIM = HIDDEN // N_HEADS
INTERMEDIATE = 64
N_LAYERS = 2
MAX_POS = 32
BATCH = 2
SEQ = 8
LN_EPS = 1e-12


def _gelu(x):
    # tanh approximation of GELU
    c = math.sqrt(2.0 / math.pi)
    return 0.5 * x * (1.0 + jnp.tanh(c * (x + 0.044715 * x * x * x)))


def _layernorm(x, g, b):
    mean = jnp.mean(x, axis=-1, keepdims=True)
    xc = x - mean
    var = jnp.mean(xc * xc, axis=-1, keepdims=True)
    inv = jax.lax.rsqrt(var + LN_EPS)
    return xc * inv * g + b


# ---------------- single fused kernel ----------------
# embeddings-LN -> L encoder layers (attn + FFN) -> pooler -> fc -> sigmoid
def _fused_bert_kernel(h0_ref, bias_ref, emb_g_ref, emb_b_ref,
                       wqkv_ref, bqkv_ref, wo_ref, bo_ref,
                       ln1g_ref, ln1b_ref, w1_ref, b1_ref,
                       w2_ref, b2_ref, ln2g_ref, ln2b_ref,
                       poolw_ref, poolb_ref, fcw_ref, fcb_ref,
                       out_ref):
    h = _layernorm(h0_ref[...], emb_g_ref[...], emb_b_ref[...])   # (B*S, H)
    bias = bias_ref[...]                                          # (B*S, B*S) block-diag mask bias
    scale = 1.0 / math.sqrt(HEAD_DIM)

    for li in range(N_LAYERS):           # static unroll over layers
        wqkv = wqkv_ref[li]              # (H, 3H)  (static layer index -> static slice)
        bqkv = bqkv_ref[li]              # (1, 3H)
        wo = wo_ref[li]                  # (H, H)

        # fused QKV projection (single wide matmul)
        qkv = jnp.dot(h, wqkv, preferred_element_type=jnp.float32) + bqkv   # (B*S, 3H)
        q = qkv[:, 0:HIDDEN]
        k = qkv[:, HIDDEN:2 * HIDDEN]
        v = qkv[:, 2 * HIDDEN:3 * HIDDEN]

        # block-diagonal batched attention: all batch rows at once, per head.
        # Output projection folded into the head loop (ctx @ Wo == sum_h ctx_h @ Wo_h).
        acc = None
        for hd in range(N_HEADS):
            c0, c1 = hd * HEAD_DIM, (hd + 1) * HEAD_DIM
            qh = q[:, c0:c1]                                       # (B*S, Dh)
            kh = k[:, c0:c1]
            vh = v[:, c0:c1]
            s = jax.lax.dot_general(
                qh, kh, (((1,), (1,)), ((), ())),
                preferred_element_type=jnp.float32) * scale + bias           # (B*S, B*S)
            m = jnp.max(s, axis=-1, keepdims=True)
            p = jnp.exp(s - m)
            inv = pl.reciprocal(jnp.sum(p, axis=-1, keepdims=True), approx=True)
            p = p * inv
            ctx = jnp.dot(p, vh, preferred_element_type=jnp.float32)         # (B*S, Dh)
            part = jnp.dot(ctx, wo[c0:c1, :],
                           preferred_element_type=jnp.float32)               # (B*S, H)
            acc = part if acc is None else acc + part
        attn_out = acc + bo_ref[li]                                          # (B*S, H)

        # residual + LN fused as epilogue
        h = _layernorm(attn_out + h, ln1g_ref[li], ln1b_ref[li])

        # feed-forward block (GELU), residual + LN epilogue
        ff = _gelu(jnp.dot(h, w1_ref[li], preferred_element_type=jnp.float32) + b1_ref[li])
        ff = jnp.dot(ff, w2_ref[li], preferred_element_type=jnp.float32) + b2_ref[li]
        h = _layernorm(ff + h, ln2g_ref[li], ln2b_ref[li])

    # pooler (CLS rows) + classification head + sigmoid, all in-kernel
    cls = jnp.concatenate([h[b * SEQ:b * SEQ + 1, :] for b in range(BATCH)], axis=0)  # (B, H)
    pooled = jnp.tanh(jnp.dot(cls, poolw_ref[...],
                              preferred_element_type=jnp.float32) + poolb_ref[...])
    logit = jnp.dot(pooled, fcw_ref[...],
                    preferred_element_type=jnp.float32) + fcb_ref[...]                # (B, 1)
    out_ref[...] = (1.0 / (1.0 + jnp.exp(-logit))).astype(out_ref.dtype)


# ---------------- parameter init (deterministic, synthetic) ----------------
def init_params(key):
    def norm(k, shape, scale=0.02):
        return (scale * jax.random.normal(k, shape)).astype(jnp.float32)

    keys = jax.random.split(key, 8 + N_LAYERS)
    p = {
        "word_emb": norm(keys[0], (VOCAB, HIDDEN)),
        "pos_emb": norm(keys[1], (MAX_POS, HIDDEN)),
        "type_emb": norm(keys[2], (1, HIDDEN)),
        "emb_ln_g": jnp.ones((HIDDEN,), jnp.float32),
        "emb_ln_b": jnp.zeros((HIDDEN,), jnp.float32),
        "pool_w": norm(keys[3], (HIDDEN, HIDDEN)),
        "pool_b": jnp.zeros((HIDDEN,), jnp.float32),
        "fc_w": norm(keys[4], (HIDDEN, 1)),
        "fc_b": jnp.zeros((1,), jnp.float32),
        "layers": [],
    }
    for li in range(N_LAYERS):
        lk = jax.random.split(keys[8 + li], 6)
        p["layers"].append({
            "wq": norm(lk[0], (HIDDEN, HIDDEN)), "bq": jnp.zeros((HIDDEN,), jnp.float32),
            "wk": norm(lk[1], (HIDDEN, HIDDEN)), "bk": jnp.zeros((HIDDEN,), jnp.float32),
            "wv": norm(lk[2], (HIDDEN, HIDDEN)), "bv": jnp.zeros((HIDDEN,), jnp.float32),
            "wo": norm(lk[3], (HIDDEN, HIDDEN)), "bo": jnp.zeros((HIDDEN,), jnp.float32),
            "ln1_g": jnp.ones((HIDDEN,), jnp.float32), "ln1_b": jnp.zeros((HIDDEN,), jnp.float32),
            "w1": norm(lk[4], (HIDDEN, INTERMEDIATE)), "b1": jnp.zeros((INTERMEDIATE,), jnp.float32),
            "w2": norm(lk[5], (INTERMEDIATE, HIDDEN)), "b2": jnp.zeros((HIDDEN,), jnp.float32),
            "ln2_g": jnp.ones((HIDDEN,), jnp.float32), "ln2_b": jnp.zeros((HIDDEN,), jnp.float32),
        })
    return p


# ---------------- full forward: bert(context, mask) -> pooled -> fc -> sigmoid ----------------
def model_forward(params, x):
    context = x[0]          # (B, S) int32 token ids
    mask = x[2]             # (B, S) attention mask (1 = attend)
    B, S = context.shape

    # embedding gather + sum (glue; no clean Pallas equivalent for int gather at this size)
    # TODO(synk): integer embedding gather stays in plain JAX (tiny tables).
    emb = (params["word_emb"][context]
           + params["pos_emb"][jnp.arange(S)][None, :, :]
           + params["type_emb"][0][None, None, :])
    h0 = emb.reshape(B * S, HIDDEN).astype(jnp.float32)

    # block-diagonal additive attention bias over the flattened (B*S) token set:
    #   0      for same-batch, unmasked keys
    #   -1e9   for masked keys or cross-batch pairs  (exp underflows to exactly 0,
    #          so results match per-batch attention bit-for-bit)
    mask_flat = mask.astype(jnp.float32).reshape(-1)                  # (B*S,)
    batch_id = jnp.repeat(jnp.arange(B), S)                           # (B*S,)
    same_batch = batch_id[:, None] == batch_id[None, :]               # (B*S, B*S)
    attend = jnp.logical_and(same_batch, mask_flat[None, :] > 0.5)
    bias_full = jnp.where(attend, 0.0, -1e9).astype(jnp.float32)      # (B*S, B*S)

    layers = params["layers"]
    # fused QKV weights + stacked per-layer params (leading layer axis, static-indexed in-kernel)
    wqkv = jnp.stack([jnp.concatenate([l["wq"], l["wk"], l["wv"]], axis=1) for l in layers])
    bqkv = jnp.stack([jnp.concatenate([l["bq"], l["bk"], l["bv"]], axis=0).reshape(1, 3 * HIDDEN)
                      for l in layers])
    wo = jnp.stack([l["wo"] for l in layers])
    bo = jnp.stack([l["bo"].reshape(1, HIDDEN) for l in layers])
    ln1g = jnp.stack([l["ln1_g"].reshape(1, HIDDEN) for l in layers])
    ln1b = jnp.stack([l["ln1_b"].reshape(1, HIDDEN) for l in layers])
    w1 = jnp.stack([l["w1"] for l in layers])
    b1 = jnp.stack([l["b1"].reshape(1, INTERMEDIATE) for l in layers])
    w2 = jnp.stack([l["w2"] for l in layers])
    b2 = jnp.stack([l["b2"].reshape(1, HIDDEN) for l in layers])
    ln2g = jnp.stack([l["ln2_g"].reshape(1, HIDDEN) for l in layers])
    ln2b = jnp.stack([l["ln2_b"].reshape(1, HIDDEN) for l in layers])

    inputs = (
        h0, bias_full,
        params["emb_ln_g"].reshape(1, HIDDEN), params["emb_ln_b"].reshape(1, HIDDEN),
        wqkv, bqkv, wo, bo, ln1g, ln1b, w1, b1, w2, b2, ln2g, ln2b,
        params["pool_w"], params["pool_b"].reshape(1, HIDDEN),
        params["fc_w"], params["fc_b"].reshape(1, 1),
    )

    vmem = pl.BlockSpec(memory_space=pltpu.MemorySpace.VMEM)
    out = pl.pallas_call(
        _fused_bert_kernel,
        out_shape=jax.ShapeDtypeStruct((B, 1), jnp.float32),
        in_specs=[vmem] * len(inputs),
        out_specs=vmem,
    )(*inputs)
    return out                                                         # (B, 1)


if __name__ == "__main__":
    key = jax.random.PRNGKey(0)
    pkey, ikey = jax.random.split(key)
    params = init_params(pkey)

    context = jax.random.randint(ikey, (BATCH, SEQ), 0, VOCAB, dtype=jnp.int32)
    token_type = jnp.zeros((BATCH, SEQ), jnp.int32)
    mask = jnp.array([[1, 1, 1, 1, 1, 1, 0, 0],
                      [1, 1, 1, 1, 1, 1, 1, 1]], dtype=jnp.int32)
    x = (context, token_type, mask)

    out = model_forward(params, x)
    out = jax.block_until_ready(out)
    assert out.shape == (BATCH, 1)
    assert bool(jnp.all((out >= 0.0) & (out <= 1.0)))
    assert bool(jnp.all(jnp.isfinite(out)))
    print("KERNEL_OK")
</pallas_src>

<mosaic_0001>
module attributes {stable_mosaic.version = 11 : i64} {
  func.func @_fused_bert_kernel(%arg0: memref<16x32xf32, #tpu.memory_space<vmem>>, %arg1: memref<16x16xf32, #tpu.memory_space<vmem>>, %arg2: memref<1x32xf32, #tpu.memory_space<vmem>>, %arg3: memref<1x32xf32, #tpu.memory_space<vmem>>, %arg4: memref<2x32x96xf32, #tpu.memory_space<vmem>>, %arg5: memref<2x1x96xf32, #tpu.memory_space<vmem>>, %arg6: memref<2x32x32xf32, #tpu.memory_space<vmem>>, %arg7: memref<2x1x32xf32, #tpu.memory_space<vmem>>, %arg8: memref<2x1x32xf32, #tpu.memory_space<vmem>>, %arg9: memref<2x1x32xf32, #tpu.memory_space<vmem>>, %arg10: memref<2x32x64xf32, #tpu.memory_space<vmem>>, %arg11: memref<2x1x64xf32, #tpu.memory_space<vmem>>, %arg12: memref<2x64x32xf32, #tpu.memory_space<vmem>>, %arg13: memref<2x1x32xf32, #tpu.memory_space<vmem>>, %arg14: memref<2x1x32xf32, #tpu.memory_space<vmem>>, %arg15: memref<2x1x32xf32, #tpu.memory_space<vmem>>, %arg16: memref<32x32xf32, #tpu.memory_space<vmem>>, %arg17: memref<1x32xf32, #tpu.memory_space<vmem>>, %arg18: memref<32x1xf32, #tpu.memory_space<vmem>>, %arg19: memref<1x1xf32, #tpu.memory_space<vmem>>, %arg20: memref<2x1xf32, #tpu.memory_space<vmem>>) attributes {dimension_semantics = [], scalar_prefetch = 0 : i64, scratch_operands = 0 : i64, tpu.core_type = #tpu.core_type<tc>} {
    %c0 = arith.constant 0 : index
    %c0_0 = arith.constant 0 : index
    %0 = vector.load %arg0[%c0, %c0_0] : memref<16x32xf32, #tpu.memory_space<vmem>>, vector<16x32xf32>
    %c0_1 = arith.constant 0 : index
    %c0_2 = arith.constant 0 : index
    %1 = vector.load %arg2[%c0_1, %c0_2] : memref<1x32xf32, #tpu.memory_space<vmem>>, vector<1x32xf32>
    %c0_3 = arith.constant 0 : index
    %c0_4 = arith.constant 0 : index
    %2 = vector.load %arg3[%c0_3, %c0_4] : memref<1x32xf32, #tpu.memory_space<vmem>>, vector<1x32xf32>
    %cst = arith.constant dense<0.000000e+00> : vector<16xf32>
    %3 = vector.multi_reduction <add>, %0, %cst [1] : vector<16x32xf32> to vector<16xf32>
    %4 = vector.shape_cast %3 : vector<16xf32> to vector<16x1xf32>
    %cst_5 = arith.constant 3.200000e+01 : f32
    %5 = vector.broadcast %cst_5 : f32 to vector<16x1xf32>
    %6 = arith.divf %4, %5 : vector<16x1xf32>
    %7 = vector.broadcast %6 : vector<16x1xf32> to vector<16x32xf32>
    %8 = arith.subf %0, %7 : vector<16x32xf32>
    %9 = arith.mulf %8, %8 : vector<16x32xf32>
    %cst_6 = arith.constant dense<0.000000e+00> : vector<16xf32>
    %10 = vector.multi_reduction <add>, %9, %cst_6 [1] : vector<16x32xf32> to vector<16xf32>
    %11 = vector.shape_cast %10 : vector<16xf32> to vector<16x1xf32>
    %cst_7 = arith.constant 3.200000e+01 : f32
    %12 = vector.broadcast %cst_7 : f32 to vector<16x1xf32>
    %13 = arith.divf %11, %12 : vector<16x1xf32>
    %cst_8 = arith.constant 9.99999996E-13 : f32
    %14 = vector.broadcast %cst_8 : f32 to vector<16x1xf32>
    %15 = arith.addf %13, %14 : vector<16x1xf32>
    %16 = math.rsqrt %15 : vector<16x1xf32>
    %17 = vector.broadcast %16 : vector<16x1xf32> to vector<16x32xf32>
    %18 = arith.mulf %8, %17 : vector<16x32xf32>
    %19 = vector.broadcast %1 : vector<1x32xf32> to vector<16x32xf32>
    %20 = arith.mulf %18, %19 : vector<16x32xf32>
    %21 = vector.broadcast %2 : vector<1x32xf32> to vector<16x32xf32>
    %22 = arith.addf %20, %21 : vector<16x32xf32>
    %c0_9 = arith.constant 0 : index
    %c0_10 = arith.constant 0 : index
    %23 = vector.load %arg1[%c0_9, %c0_10] : memref<16x16xf32, #tpu.memory_space<vmem>>, vector<16x16xf32>
    %c0_11 = arith.constant 0 : index
    %c0_12 = arith.constant 0 : index
    %c0_13 = arith.constant 0 : index
    %24 = vector.load %arg4[%c0_11, %c0_12, %c0_13] : memref<2x32x96xf32, #tpu.memory_space<vmem>>, vector<1x32x96xf32>
    %25 = vector.shape_cast %24 : vector<1x32x96xf32> to vector<32x96xf32>
    %c0_14 = arith.constant 0 : index
    %c0_15 = arith.constant 0 : index
    %c0_16 = arith.constant 0 : index
    %26 = vector.load %arg5[%c0_14, %c0_15, %c0_16] : memref<2x1x96xf32, #tpu.memory_space<vmem>>, vector<1x1x96xf32>
    %27 = vector.shape_cast %26 : vector<1x1x96xf32> to vector<1x96xf32>
    %c0_17 = arith.constant 0 : index
    %c0_18 = arith.constant 0 : index
    %c0_19 = arith.constant 0 : index
    %28 = vector.load %arg6[%c0_17, %c0_18, %c0_19] : memref<2x32x32xf32, #tpu.memory_space<vmem>>, vector<1x32x32xf32>
    %29 = vector.shape_cast %28 : vector<1x32x32xf32> to vector<32x32xf32>
    %cst_20 = arith.constant dense<0.000000e+00> : vector<16x96xf32>
    %30 = tpu.matmul %22, %25, %cst_20 {dimension_numbers = #tpu.dot_dimension_numbers<[1], [0], [0], [1], [0, 0, 1, 1], [], []>} : vector<16x32xf32>, vector<32x96xf32>, vector<16x96xf32> -> vector<16x96xf32>
    %31 = vector.broadcast %27 : vector<1x96xf32> to vector<16x96xf32>
    %32 = arith.addf %30, %31 : vector<16x96xf32>
    %33 = vector.extract_strided_slice %32 {offsets = [0, 0], sizes = [16, 32], strides = [1, 1]} : vector<16x96xf32> to vector<16x32xf32>
    %34 = vector.extract_strided_slice %32 {offsets = [0, 32], sizes = [16, 32], strides = [1, 1]} : vector<16x96xf32> to vector<16x32xf32>
    %35 = vector.extract_strided_slice %32 {offsets = [0, 64], sizes = [16, 32], strides = [1, 1]} : vector<16x96xf32> to vector<16x32xf32>
    %36 = vector.extract_strided_slice %33 {offsets = [0, 0], sizes = [16, 8], strides = [1, 1]} : vector<16x32xf32> to vector<16x8xf32>
    %37 = vector.extract_strided_slice %34 {offsets = [0, 0], sizes = [16, 8], strides = [1, 1]} : vector<16x32xf32> to vector<16x8xf32>
    %38 = vector.extract_strided_slice %35 {offsets = [0, 0], sizes = [16, 8], strides = [1, 1]} : vector<16x32xf32> to vector<16x8xf32>
    %cst_21 = arith.constant dense<0.000000e+00> : vector<16x16xf32>
    %39 = tpu.matmul %36, %37, %cst_21 {dimension_numbers = #tpu.dot_dimension_numbers<[1], [1], [0], [0], [0, 0, 1, 0], [], []>} : vector<16x8xf32>, vector<16x8xf32>, vector<16x16xf32> -> vector<16x16xf32>
    %cst_22 = arith.constant 0.353553385 : f32
    %40 = vector.broadcast %cst_22 : f32 to vector<16x16xf32>
    %41 = arith.mulf %39, %40 : vector<16x16xf32>
    %42 = arith.addf %41, %23 : vector<16x16xf32>
    %cst_23 = arith.constant dense<0xFF800000> : vector<16xf32>
    %43 = vector.multi_reduction <maximumf>, %42, %cst_23 [1] : vector<16x16xf32> to vector<16xf32>
    %44 = vector.shape_cast %43 : vector<16xf32> to vector<16x1xf32>
    %45 = vector.broadcast %44 : vector<16x1xf32> to vector<16x16xf32>
    %46 = arith.subf %42, %45 : vector<16x16xf32>
    %47 = math.exp %46 : vector<16x16xf32>
    %cst_24 = arith.constant dense<0.000000e+00> : vector<16xf32>
    %48 = vector.multi_reduction <add>, %47, %cst_24 [1] : vector<16x16xf32> to vector<16xf32>
    %49 = vector.shape_cast %48 : vector<16xf32> to vector<16x1xf32>
    %50 = tpu.reciprocal %49 {approx = true} : vector<16x1xf32> -> vector<16x1xf32>
    %51 = vector.broadcast %50 : vector<16x1xf32> to vector<16x16xf32>
    %52 = arith.mulf %47, %51 : vector<16x16xf32>
    %cst_25 = arith.constant dense<0.000000e+00> : vector<16x8xf32>
    %53 = tpu.matmul %52, %38, %cst_25 {dimension_numbers = #tpu.dot_dimension_numbers<[1], [0], [0], [1], [0, 0, 1, 1], [], []>} : vector<16x16xf32>, vector<16x8xf32>, vector<16x8xf32> -> vector<16x8xf32>
    %54 = vector.extract_strided_slice %29 {offsets = [0, 0], sizes = [8, 32], strides = [1, 1]} : vector<32x32xf32> to vector<8x32xf32>
    %cst_26 = arith.constant dense<0.000000e+00> : vector<16x32xf32>
    %55 = tpu.matmul %53, %54, %cst_26 {dimension_numbers = #tpu.dot_dimension_numbers<[1], [0], [0], [1], [0, 0, 1, 1], [], []>} : vector<16x8xf32>, vector<8x32xf32>, vector<16x32xf32> -> vector<16x32xf32>
    %56 = vector.extract_strided_slice %33 {offsets = [0, 8], sizes = [16, 8], strides = [1, 1]} : vector<16x32xf32> to vector<16x8xf32>
    %57 = vector.extract_strided_slice %34 {offsets = [0, 8], sizes = [16, 8], strides = [1, 1]} : vector<16x32xf32> to vector<16x8xf32>
    %58 = vector.extract_strided_slice %35 {offsets = [0, 8], sizes = [16, 8], strides = [1, 1]} : vector<16x32xf32> to vector<16x8xf32>
    %cst_27 = arith.constant dense<0.000000e+00> : vector<16x16xf32>
    %59 = tpu.matmul %56, %57, %cst_27 {dimension_numbers = #tpu.dot_dimension_numbers<[1], [1], [0], [0], [0, 0, 1, 0], [], []>} : vector<16x8xf32>, vector<16x8xf32>, vector<16x16xf32> -> vector<16x16xf32>
    %cst_28 = arith.constant 0.353553385 : f32
    %60 = vector.broadcast %cst_28 : f32 to vector<16x16xf32>
    %61 = arith.mulf %59, %60 : vector<16x16xf32>
    %62 = arith.addf %61, %23 : vector<16x16xf32>
    %cst_29 = arith.constant dense<0xFF800000> : vector<16xf32>
    %63 = vector.multi_reduction <maximumf>, %62, %cst_29 [1] : vector<16x16xf32> to vector<16xf32>
    %64 = vector.shape_cast %63 : vector<16xf32> to vector<16x1xf32>
    %65 = vector.broadcast %64 : vector<16x1xf32> to vector<16x16xf32>
    %66 = arith.subf %62, %65 : vector<16x16xf32>
    %67 = math.exp %66 : vector<16x16xf32>
    %cst_30 = arith.constant dense<0.000000e+00> : vector<16xf32>
    %68 = vector.multi_reduction <add>, %67, %cst_30 [1] : vector<16x16xf32> to vector<16xf32>
    %69 = vector.shape_cast %68 : vector<16xf32> to vector<16x1xf32>
    %70 = tpu.reciprocal %69 {approx = true} : vector<16x1xf32> -> vector<16x1xf32>
    %71 = vector.broadcast %70 : vector<16x1xf32> to vector<16x16xf32>
    %72 = arith.mulf %67, %71 : vector<16x16xf32>
    %cst_31 = arith.constant dense<0.000000e+00> : vector<16x8xf32>
    %73 = tpu.matmul %72, %58, %cst_31 {dimension_numbers = #tpu.dot_dimension_numbers<[1], [0], [0], [1], [0, 0, 1, 1], [], []>} : vector<16x16xf32>, vector<16x8xf32>, vector<16x8xf32> -> vector<16x8xf32>
    %74 = vector.extract_strided_slice %29 {offsets = [8, 0], sizes = [8, 32], strides = [1, 1]} : vector<32x32xf32> to vector<8x32xf32>
    %cst_32 = arith.constant dense<0.000000e+00> : vector<16x32xf32>
    %75 = tpu.matmul %73, %74, %cst_32 {dimension_numbers = #tpu.dot_dimension_numbers<[1], [0], [0], [1], [0, 0, 1, 1], [], []>} : vector<16x8xf32>, vector<8x32xf32>, vector<16x32xf32> -> vector<16x32xf32>
    %76 = arith.addf %55, %75 : vector<16x32xf32>
    %77 = vector.extract_strided_slice %33 {offsets = [0, 16], sizes = [16, 8], strides = [1, 1]} : vector<16x32xf32> to vector<16x8xf32>
    %78 = vector.extract_strided_slice %34 {offsets = [0, 16], sizes = [16, 8], strides = [1, 1]} : vector<16x32xf32> to vector<16x8xf32>
    %79 = vector.extract_strided_slice %35 {offsets = [0, 16], sizes = [16, 8], strides = [1, 1]} : vector<16x32xf32> to vector<16x8xf32>
    %cst_33 = arith.constant dense<0.000000e+00> : vector<16x16xf32>
    %80 = tpu.matmul %77, %78, %cst_33 {dimension_numbers = #tpu.dot_dimension_numbers<[1], [1], [0], [0], [0, 0, 1, 0], [], []>} : vector<16x8xf32>, vector<16x8xf32>, vector<16x16xf32> -> vector<16x16xf32>
    %cst_34 = arith.constant 0.353553385 : f32
    %81 = vector.broadcast %cst_34 : f32 to vector<16x16xf32>
    %82 = arith.mulf %80, %81 : vector<16x16xf32>
    %83 = arith.addf %82, %23 : vector<16x16xf32>
    %cst_35 = arith.constant dense<0xFF800000> : vector<16xf32>
    %84 = vector.multi_reduction <maximumf>, %83, %cst_35 [1] : vector<16x16xf32> to vector<16xf32>
    %85 = vector.shape_cast %84 : vector<16xf32> to vector<16x1xf32>
    %86 = vector.broadcast %85 : vector<16x1xf32> to vector<16x16xf32>
    %87 = arith.subf %83, %86 : vector<16x16xf32>
    %88 = math.exp %87 : vector<16x16xf32>
    %cst_36 = arith.constant dense<0.000000e+00> : vector<16xf32>
    %89 = vector.multi_reduction <add>, %88, %cst_36 [1] : vector<16x16xf32> to vector<16xf32>
    %90 = vector.shape_cast %89 : vector<16xf32> to vector<16x1xf32>
    %91 = tpu.reciprocal %90 {approx = true} : vector<16x1xf32> -> vector<16x1xf32>
    %92 = vector.broadcast %91 : vector<16x1xf32> to vector<16x16xf32>
    %93 = arith.mulf %88, %92 : vector<16x16xf32>
    %cst_37 = arith.constant dense<0.000000e+00> : vector<16x8xf32>
    %94 = tpu.matmul %93, %79, %cst_37 {dimension_numbers = #tpu.dot_dimension_numbers<[1], [0], [0], [1], [0, 0, 1, 1], [], []>} : vector<16x16xf32>, vector<16x8xf32>, vector<16x8xf32> -> vector<16x8xf32>
    %95 = vector.extract_strided_slice %29 {offsets = [16, 0], sizes = [8, 32], strides = [1, 1]} : vector<32x32xf32> to vector<8x32xf32>
    %cst_38 = arith.constant dense<0.000000e+00> : vector<16x32xf32>
    %96 = tpu.matmul %94, %95, %cst_38 {dimension_numbers = #tpu.dot_dimension_numbers<[1], [0], [0], [1], [0, 0, 1, 1], [], []>} : vector<16x8xf32>, vector<8x32xf32>, vector<16x32xf32> -> vector<16x32xf32>
    %97 = arith.addf %76, %96 : vector<16x32xf32>
    %98 = vector.extract_strided_slice %33 {offsets = [0, 24], sizes = [16, 8], strides = [1, 1]} : vector<16x32xf32> to vector<16x8xf32>
    %99 = vector.extract_strided_slice %34 {offsets = [0, 24], sizes = [16, 8], strides = [1, 1]} : vector<16x32xf32> to vector<16x8xf32>
    %100 = vector.extract_strided_slice %35 {offsets = [0, 24], sizes = [16, 8], strides = [1, 1]} : vector<16x32xf32> to vector<16x8xf32>
    %cst_39 = arith.constant dense<0.000000e+00> : vector<16x16xf32>
    %101 = tpu.matmul %98, %99, %cst_39 {dimension_numbers = #tpu.dot_dimension_numbers<[1], [1], [0], [0], [0, 0, 1, 0], [], []>} : vector<16x8xf32>, vector<16x8xf32>, vector<16x16xf32> -> vector<16x16xf32>
    %cst_40 = arith.constant 0.353553385 : f32
    %102 = vector.broadcast %cst_40 : f32 to vector<16x16xf32>
    %103 = arith.mulf %101, %102 : vector<16x16xf32>
    %104 = arith.addf %103, %23 : vector<16x16xf32>
    %cst_41 = arith.constant dense<0xFF800000> : vector<16xf32>
    %105 = vector.multi_reduction <maximumf>, %104, %cst_41 [1] : vector<16x16xf32> to vector<16xf32>
    %106 = vector.shape_cast %105 : vector<16xf32> to vector<16x1xf32>
    %107 = vector.broadcast %106 : vector<16x1xf32> to vector<16x16xf32>
    %108 = arith.subf %104, %107 : vector<16x16xf32>
    %109 = math.exp %108 : vector<16x16xf32>
    %cst_42 = arith.constant dense<0.000000e+00> : vector<16xf32>
    %110 = vector.multi_reduction <add>, %109, %cst_42 [1] : vector<16x16xf32> to vector<16xf32>
    %111 = vector.shape_cast %110 : vector<16xf32> to vector<16x1xf32>
    %112 = tpu.reciprocal %111 {approx = true} : vector<16x1xf32> -> vector<16x1xf32>
    %113 = vector.broadcast %112 : vector<16x1xf32> to vector<16x16xf32>
    %114 = arith.mulf %109, %113 : vector<16x16xf32>
    %cst_43 = arith.constant dense<0.000000e+00> : vector<16x8xf32>
    %115 = tpu.matmul %114, %100, %cst_43 {dimension_numbers = #tpu.dot_dimension_numbers<[1], [0], [0], [1], [0, 0, 1, 1], [], []>} : vector<16x16xf32>, vector<16x8xf32>, vector<16x8xf32> -> vector<16x8xf32>
    %116 = vector.extract_strided_slice %29 {offsets = [24, 0], sizes = [8, 32], strides = [1, 1]} : vector<32x32xf32> to vector<8x32xf32>
    %cst_44 = arith.constant dense<0.000000e+00> : vector<16x32xf32>
    %117 = tpu.matmul %115, %116, %cst_44 {dimension_numbers = #tpu.dot_dimension_numbers<[1], [0], [0], [1], [0, 0, 1, 1], [], []>} : vector<16x8xf32>, vector<8x32xf32>, vector<16x32xf32> -> vector<16x32xf32>
    %118 = arith.addf %97, %117 : vector<16x32xf32>
    %c0_45 = arith.constant 0 : index
    %c0_46 = arith.constant 0 : index
    %c0_47 = arith.constant 0 : index
    %119 = vector.load %arg7[%c0_45, %c0_46, %c0_47] : memref<2x1x32xf32, #tpu.memory_space<vmem>>, vector<1x1x32xf32>
    %120 = vector.shape_cast %119 : vector<1x1x32xf32> to vector<1x32xf32>
    %121 = vector.broadcast %120 : vector<1x32xf32> to vector<16x32xf32>
    %122 = arith.addf %118, %121 : vector<16x32xf32>
    %123 = arith.addf %122, %22 : vector<16x32xf32>
    %c0_48 = arith.constant 0 : index
    %c0_49 = arith.constant 0 : index
    %c0_50 = arith.constant 0 : index
    %124 = vector.load %arg8[%c0_48, %c0_49, %c0_50] : memref<2x1x32xf32, #tpu.memory_space<vmem>>, vector<1x1x32xf32>
    %125 = vector.shape_cast %124 : vector<1x1x32xf32> to vector<1x32xf32>
    %c0_51 = arith.constant 0 : index
    %c0_52 = arith.constant 0 : index
    %c0_53 = arith.constant 0 : index
    %126 = vector.load %arg9[%c0_51, %c0_52, %c0_53] : memref<2x1x32xf32, #tpu.memory_space<vmem>>, vector<1x1x32xf32>
    %127 = vector.shape_cast %126 : vector<1x1x32xf32> to vector<1x32xf32>
    %cst_54 = arith.constant dense<0.000000e+00> : vector<16xf32>
    %128 = vector.multi_reduction <add>, %123, %cst_54 [1] : vector<16x32xf32> to vector<16xf32>
    %129 = vector.shape_cast %128 : vector<16xf32> to vector<16x1xf32>
    %cst_55 = arith.constant 3.200000e+01 : f32
    %130 = vector.broadcast %cst_55 : f32 to vector<16x1xf32>
    %131 = arith.divf %129, %130 : vector<16x1xf32>
    %132 = vector.broadcast %131 : vector<16x1xf32> to vector<16x32xf32>
    %133 = arith.subf %123, %132 : vector<16x32xf32>
    %134 = arith.mulf %133, %133 : vector<16x32xf32>
    %cst_56 = arith.constant dense<0.000000e+00> : vector<16xf32>
    %135 = vector.multi_reduction <add>, %134, %cst_56 [1] : vector<16x32xf32> to vector<16xf32>
    %136 = vector.shape_cast %135 : vector<16xf32> to vector<16x1xf32>
    %cst_57 = arith.constant 3.200000e+01 : f32
    %137 = vector.broadcast %cst_57 : f32 to vector<16x1xf32>
    %138 = arith.divf %136, %137 : vector<16x1xf32>
    %cst_58 = arith.constant 9.99999996E-13 : f32
    %139 = vector.broadcast %cst_58 : f32 to vector<16x1xf32>
    %140 = arith.addf %138, %139 : vector<16x1xf32>
    %141 = math.rsqrt %140 : vector<16x1xf32>
    %142 = vector.broadcast %141 : vector<16x1xf32> to vector<16x32xf32>
    %143 = arith.mulf %133, %142 : vector<16x32xf32>
    %144 = vector.broadcast %125 : vector<1x32xf32> to vector<16x32xf32>
    %145 = arith.mulf %143, %144 : vector<16x32xf32>
    %146 = vector.broadcast %127 : vector<1x32xf32> to vector<16x32xf32>
    %147 = arith.addf %145, %146 : vector<16x32xf32>
    %c0_59 = arith.constant 0 : index
    %c0_60 = arith.constant 0 : index
    %c0_61 = arith.constant 0 : index
    %148 = vector.load %arg10[%c0_59, %c0_60, %c0_61] : memref<2x32x64xf32, #tpu.memory_space<vmem>>, vector<1x32x64xf32>
    %149 = vector.shape_cast %148 : vector<1x32x64xf32> to vector<32x64xf32>
    %cst_62 = arith.constant dense<0.000000e+00> : vector<16x64xf32>
    %150 = tpu.matmul %147, %149, %cst_62 {dimension_numbers = #tpu.dot_dimension_numbers<[1], [0], [0], [1], [0, 0, 1, 1], [], []>} : vector<16x32xf32>, vector<32x64xf32>, vector<16x64xf32> -> vector<16x64xf32>
    %c0_63 = arith.constant 0 : index
    %c0_64 = arith.constant 0 : index
    %c0_65 = arith.constant 0 : index
    %151 = vector.load %arg11[%c0_63, %c0_64, %c0_65] : memref<2x1x64xf32, #tpu.memory_space<vmem>>, vector<1x1x64xf32>
    %152 = vector.shape_cast %151 : vector<1x1x64xf32> to vector<1x64xf32>
    %153 = vector.broadcast %152 : vector<1x64xf32> to vector<16x64xf32>
    %154 = arith.addf %150, %153 : vector<16x64xf32>
    %cst_66 = arith.constant 5.000000e-01 : f32
    %155 = vector.broadcast %cst_66 : f32 to vector<16x64xf32>
    %156 = arith.mulf %155, %154 : vector<16x64xf32>
    %cst_67 = arith.constant 4.471500e-02 : f32
    %157 = vector.broadcast %cst_67 : f32 to vector<16x64xf32>
    %158 = arith.mulf %157, %154 : vector<16x64xf32>
    %159 = arith.mulf %158, %154 : vector<16x64xf32>
    %160 = arith.mulf %159, %154 : vector<16x64xf32>
    %161 = arith.addf %154, %160 : vector<16x64xf32>
    %cst_68 = arith.constant 0.797884583 : f32
    %162 = vector.broadcast %cst_68 : f32 to vector<16x64xf32>
    %163 = arith.mulf %162, %161 : vector<16x64xf32>
    %164 = math.tanh %163 : vector<16x64xf32>
    %cst_69 = arith.constant 1.000000e+00 : f32
    %165 = vector.broadcast %cst_69 : f32 to vector<16x64xf32>
    %166 = arith.addf %165, %164 : vector<16x64xf32>
    %167 = arith.mulf %156, %166 : vector<16x64xf32>
    %c0_70 = arith.constant 0 : index
    %c0_71 = arith.constant 0 : index
    %c0_72 = arith.constant 0 : index
    %168 = vector.load %arg12[%c0_70, %c0_71, %c0_72] : memref<2x64x32xf32, #tpu.memory_space<vmem>>, vector<1x64x32xf32>
    %169 = vector.shape_cast %168 : vector<1x64x32xf32> to vector<64x32xf32>
    %cst_73 = arith.constant dense<0.000000e+00> : vector<16x32xf32>
    %170 = tpu.matmul %167, %169, %cst_73 {dimension_numbers = #tpu.dot_dimension_numbers<[1], [0], [0], [1], [0, 0, 1, 1], [], []>} : vector<16x64xf32>, vector<64x32xf32>, vector<16x32xf32> -> vector<16x32xf32>
    %c0_74 = arith.constant 0 : index
    %c0_75 = arith.constant 0 : index
    %c0_76 = arith.constant 0 : index
    %171 = vector.load %arg13[%c0_74, %c0_75, %c0_76] : memref<2x1x32xf32, #tpu.memory_space<vmem>>, vector<1x1x32xf32>
    %172 = vector.shape_cast %171 : vector<1x1x32xf32> to vector<1x32xf32>
    %173 = vector.broadcast %172 : vector<1x32xf32> to vector<16x32xf32>
    %174 = arith.addf %170, %173 : vector<16x32xf32>
    %175 = arith.addf %174, %147 : vector<16x32xf32>
    %c0_77 = arith.constant 0 : index
    %c0_78 = arith.constant 0 : index
    %c0_79 = arith.constant 0 : index
    %176 = vector.load %arg14[%c0_77, %c0_78, %c0_79] : memref<2x1x32xf32, #tpu.memory_space<vmem>>, vector<1x1x32xf32>
    %177 = vector.shape_cast %176 : vector<1x1x32xf32> to vector<1x32xf32>
    %c0_80 = arith.constant 0 : index
    %c0_81 = arith.constant 0 : index
    %c0_82 = arith.constant 0 : index
    %178 = vector.load %arg15[%c0_80, %c0_81, %c0_82] : memref<2x1x32xf32, #tpu.memory_space<vmem>>, vector<1x1x32xf32>
    %179 = vector.shape_cast %178 : vector<1x1x32xf32> to vector<1x32xf32>
    %cst_83 = arith.constant dense<0.000000e+00> : vector<16xf32>
    %180 = vector.multi_reduction <add>, %175, %cst_83 [1] : vector<16x32xf32> to vector<16xf32>
    %181 = vector.shape_cast %180 : vector<16xf32> to vector<16x1xf32>
    %cst_84 = arith.constant 3.200000e+01 : f32
    %182 = vector.broadcast %cst_84 : f32 to vector<16x1xf32>
    %183 = arith.divf %181, %182 : vector<16x1xf32>
    %184 = vector.broadcast %183 : vector<16x1xf32> to vector<16x32xf32>
    %185 = arith.subf %175, %184 : vector<16x32xf32>
    %186 = arith.mulf %185, %185 : vector<16x32xf32>
    %cst_85 = arith.constant dense<0.000000e+00> : vector<16xf32>
    %187 = vector.multi_reduction <add>, %186, %cst_85 [1] : vector<16x32xf32> to vector<16xf32>
    %188 = vector.shape_cast %187 : vector<16xf32> to vector<16x1xf32>
    %cst_86 = arith.constant 3.200000e+01 : f32
    %189 = vector.broadcast %cst_86 : f32 to vector<16x1xf32>
    %190 = arith.divf %188, %189 : vector<16x1xf32>
    %cst_87 = arith.constant 9.99999996E-13 : f32
    %191 = vector.broadcast %cst_87 : f32 to vector<16x1xf32>
    %192 = arith.addf %190, %191 : vector<16x1xf32>
    %193 = math.rsqrt %192 : vector<16x1xf32>
    %194 = vector.broadcast %193 : vector<16x1xf32> to vector<16x32xf32>
    %195 = arith.mulf %185, %194 : vector<16x32xf32>
    %196 = vector.broadcast %177 : vector<1x32xf32> to vector<16x32xf32>
    %197 = arith.mulf %195, %196 : vector<16x32xf32>
    %198 = vector.broadcast %179 : vector<1x32xf32> to vector<16x32xf32>
    %199 = arith.addf %197, %198 : vector<16x32xf32>
    %c1 = arith.constant 1 : index
    %c0_88 = arith.constant 0 : index
    %c0_89 = arith.constant 0 : index
    %200 = vector.load %arg4[%c1, %c0_88, %c0_89] : memref<2x32x96xf32, #tpu.memory_space<vmem>>, vector<1x32x96xf32>
    %201 = vector.shape_cast %200 : vector<1x32x96xf32> to vector<32x96xf32>
    %c1_90 = arith.constant 1 : index
    %c0_91 = arith.constant 0 : index
    %c0_92 = arith.constant 0 : index
    %202 = vector.load %arg5[%c1_90, %c0_91, %c0_92] : memref<2x1x96xf32, #tpu.memory_space<vmem>>, vector<1x1x96xf32>
    %203 = vector.shape_cast %202 : vector<1x1x96xf32> to vector<1x96xf32>
    %c1_93 = arith.constant 1 : index
    %c0_94 = arith.constant 0 : index
    %c0_95 = arith.constant 0 : index
    %204 = vector.load %arg6[%c1_93, %c0_94, %c0_95] : memref<2x32x32xf32, #tpu.memory_space<vmem>>, vector<1x32x32xf32>
    %205 = vector.shape_cast %204 : vector<1x32x32xf32> to vector<32x32xf32>
    %cst_96 = arith.constant dense<0.000000e+00> : vector<16x96xf32>
    %206 = tpu.matmul %199, %201, %cst_96 {dimension_numbers = #tpu.dot_dimension_numbers<[1], [0], [0], [1], [0, 0, 1, 1], [], []>} : vector<16x32xf32>, vector<32x96xf32>, vector<16x96xf32> -> vector<16x96xf32>
    %207 = vector.broadcast %203 : vector<1x96xf32> to vector<16x96xf32>
    %208 = arith.addf %206, %207 : vector<16x96xf32>
    %209 = vector.extract_strided_slice %208 {offsets = [0, 0], sizes = [16, 32], strides = [1, 1]} : vector<16x96xf32> to vector<16x32xf32>
    %210 = vector.extract_strided_slice %208 {offsets = [0, 32], sizes = [16, 32], strides = [1, 1]} : vector<16x96xf32> to vector<16x32xf32>
    %211 = vector.extract_strided_slice %208 {offsets = [0, 64], sizes = [16, 32], strides = [1, 1]} : vector<16x96xf32> to vector<16x32xf32>
    %212 = vector.extract_strided_slice %209 {offsets = [0, 0], sizes = [16, 8], strides = [1, 1]} : vector<16x32xf32> to vector<16x8xf32>
    %213 = vector.extract_strided_slice %210 {offsets = [0, 0], sizes = [16, 8], strides = [1, 1]} : vector<16x32xf32> to vector<16x8xf32>
    %214 = vector.extract_strided_slice %211 {offsets = [0, 0], sizes = [16, 8], strides = [1, 1]} : vector<16x32xf32> to vector<16x8xf32>
    %cst_97 = arith.constant dense<0.000000e+00> : vector<16x16xf32>
    %215 = tpu.matmul %212, %213, %cst_97 {dimension_numbers = #tpu.dot_dimension_numbers<[1], [1], [0], [0], [0, 0, 1, 0], [], []>} : vector<16x8xf32>, vector<16x8xf32>, vector<16x16xf32> -> vector<16x16xf32>
    %cst_98 = arith.constant 0.353553385 : f32
    %216 = vector.broadcast %cst_98 : f32 to vector<16x16xf32>
    %217 = arith.mulf %215, %216 : vector<16x16xf32>
    %218 = arith.addf %217, %23 : vector<16x16xf32>
    %cst_99 = arith.constant dense<0xFF800000> : vector<16xf32>
    %219 = vector.multi_reduction <maximumf>, %218, %cst_99 [1] : vector<16x16xf32> to vector<16xf32>
    %220 = vector.shape_cast %219 : vector<16xf32> to vector<16x1xf32>
    %221 = vector.broadcast %220 : vector<16x1xf32> to vector<16x16xf32>
    %222 = arith.subf %218, %221 : vector<16x16xf32>
    %223 = math.exp %222 : vector<16x16xf32>
    %cst_100 = arith.constant dense<0.000000e+00> : vector<16xf32>
    %224 = vector.multi_reduction <add>, %223, %cst_100 [1] : vector<16x16xf32> to vector<16xf32>
    %225 = vector.shape_cast %224 : vector<16xf32> to vector<16x1xf32>
    %226 = tpu.reciprocal %225 {approx = true} : vector<16x1xf32> -> vector<16x1xf32>
    %227 = vector.broadcast %226 : vector<16x1xf32> to vector<16x16xf32>
    %228 = arith.mulf %223, %227 : vector<16x16xf32>
    %cst_101 = arith.constant dense<0.000000e+00> : vector<16x8xf32>
    %229 = tpu.matmul %228, %214, %cst_101 {dimension_numbers = #tpu.dot_dimension_numbers<[1], [0], [0], [1], [0, 0, 1, 1], [], []>} : vector<16x16xf32>, vector<16x8xf32>, vector<16x8xf32> -> vector<16x8xf32>
    %230 = vector.extract_strided_slice %205 {offsets = [0, 0], sizes = [8, 32], strides = [1, 1]} : vector<32x32xf32> to vector<8x32xf32>
    %cst_102 = arith.constant dense<0.000000e+00> : vector<16x32xf32>
    %231 = tpu.matmul %229, %230, %cst_102 {dimension_numbers = #tpu.dot_dimension_numbers<[1], [0], [0], [1], [0, 0, 1, 1], [], []>} : vector<16x8xf32>, vector<8x32xf32>, vector<16x32xf32> -> vector<16x32xf32>
    %232 = vector.extract_strided_slice %209 {offsets = [0, 8], sizes = [16, 8], strides = [1, 1]} : vector<16x32xf32> to vector<16x8xf32>
    %233 = vector.extract_strided_slice %210 {offsets = [0, 8], sizes = [16, 8], strides = [1, 1]} : vector<16x32xf32> to vector<16x8xf32>
    %234 = vector.extract_strided_slice %211 {offsets = [0, 8], sizes = [16, 8], strides = [1, 1]} : vector<16x32xf32> to vector<16x8xf32>
    %cst_103 = arith.constant dense<0.000000e+00> : vector<16x16xf32>
    %235 = tpu.matmul %232, %233, %cst_103 {dimension_numbers = #tpu.dot_dimension_numbers<[1], [1], [0], [0], [0, 0, 1, 0], [], []>} : vector<16x8xf32>, vector<16x8xf32>, vector<16x16xf32> -> vector<16x16xf32>
    %cst_104 = arith.constant 0.353553385 : f32
    %236 = vector.broadcast %cst_104 : f32 to vector<16x16xf32>
    %237 = arith.mulf %235, %236 : vector<16x16xf32>
    %238 = arith.addf %237, %23 : vector<16x16xf32>
    %cst_105 = arith.constant dense<0xFF800000> : vector<16xf32>
    %239 = vector.multi_reduction <maximumf>, %238, %cst_105 [1] : vector<16x16xf32> to vector<16xf32>
    %240 = vector.shape_cast %239 : vector<16xf32> to vector<16x1xf32>
    %241 = vector.broadcast %240 : vector<16x1xf32> to vector<16x16xf32>
    %242 = arith.subf %238, %241 : vector<16x16xf32>
    %243 = math.exp %242 : vector<16x16xf32>
    %cst_106 = arith.constant dense<0.000000e+00> : vector<16xf32>
    %244 = vector.multi_reduction <add>, %243, %cst_106 [1] : vector<16x16xf32> to vector<16xf32>
    %245 = vector.shape_cast %244 : vector<16xf32> to vector<16x1xf32>
    %246 = tpu.reciprocal %245 {approx = true} : vector<16x1xf32> -> vector<16x1xf32>
    %247 = vector.broadcast %246 : vector<16x1xf32> to vector<16x16xf32>
    %248 = arith.mulf %243, %247 : vector<16x16xf32>
    %cst_107 = arith.constant dense<0.000000e+00> : vector<16x8xf32>
    %249 = tpu.matmul %248, %234, %cst_107 {dimension_numbers = #tpu.dot_dimension_numbers<[1], [0], [0], [1], [0, 0, 1, 1], [], []>} : vector<16x16xf32>, vector<16x8xf32>, vector<16x8xf32> -> vector<16x8xf32>
    %250 = vector.extract_strided_slice %205 {offsets = [8, 0], sizes = [8, 32], strides = [1, 1]} : vector<32x32xf32> to vector<8x32xf32>
    %cst_108 = arith.constant dense<0.000000e+00> : vector<16x32xf32>
    %251 = tpu.matmul %249, %250, %cst_108 {dimension_numbers = #tpu.dot_dimension_numbers<[1], [0], [0], [1], [0, 0, 1, 1], [], []>} : vector<16x8xf32>, vector<8x32xf32>, vector<16x32xf32> -> vector<16x32xf32>
    %252 = arith.addf %231, %251 : vector<16x32xf32>
    %253 = vector.extract_strided_slice %209 {offsets = [0, 16], sizes = [16, 8], strides = [1, 1]} : vector<16x32xf32> to vector<16x8xf32>
    %254 = vector.extract_strided_slice %210 {offsets = [0, 16], sizes = [16, 8], strides = [1, 1]} : vector<16x32xf32> to vector<16x8xf32>
    %255 = vector.extract_strided_slice %211 {offsets = [0, 16], sizes = [16, 8], strides = [1, 1]} : vector<16x32xf32> to vector<16x8xf32>
    %cst_109 = arith.constant dense<0.000000e+00> : vector<16x16xf32>
    %256 = tpu.matmul %253, %254, %cst_109 {dimension_numbers = #tpu.dot_dimension_numbers<[1], [1], [0], [0], [0, 0, 1, 0], [], []>} : vector<16x8xf32>, vector<16x8xf32>, vector<16x16xf32> -> vector<16x16xf32>
    %cst_110 = arith.constant 0.353553385 : f32
    %257 = vector.broadcast %cst_110 : f32 to vector<16x16xf32>
    %258 = arith.mulf %256, %257 : vector<16x16xf32>
    %259 = arith.addf %258, %23 : vector<16x16xf32>
    %cst_111 = arith.constant dense<0xFF800000> : vector<16xf32>
    %260 = vector.multi_reduction <maximumf>, %259, %cst_111 [1] : vector<16x16xf32> to vector<16xf32>
    %261 = vector.shape_cast %260 : vector<16xf32> to vector<16x1xf32>
    %262 = vector.broadcast %261 : vector<16x1xf32> to vector<16x16xf32>
    %263 = arith.subf %259, %262 : vector<16x16xf32>
    %264 = math.exp %263 : vector<16x16xf32>
    %cst_112 = arith.constant dense<0.000000e+00> : vector<16xf32>
    %265 = vector.multi_reduction <add>, %264, %cst_112 [1] : vector<16x16xf32> to vector<16xf32>
    %266 = vector.shape_cast %265 : vector<16xf32> to vector<16x1xf32>
    %267 = tpu.reciprocal %266 {approx = true} : vector<16x1xf32> -> vector<16x1xf32>
    %268 = vector.broadcast %267 : vector<16x1xf32> to vector<16x16xf32>
    %269 = arith.mulf %264, %268 : vector<16x16xf32>
    %cst_113 = arith.constant dense<0.000000e+00> : vector<16x8xf32>
    %270 = tpu.matmul %269, %255, %cst_113 {dimension_numbers = #tpu.dot_dimension_numbers<[1], [0], [0], [1], [0, 0, 1, 1], [], []>} : vector<16x16xf32>, vector<16x8xf32>, vector<16x8xf32> -> vector<16x8xf32>
    %271 = vector.extract_strided_slice %205 {offsets = [16, 0], sizes = [8, 32], strides = [1, 1]} : vector<32x32xf32> to vector<8x32xf32>
    %cst_114 = arith.constant dense<0.000000e+00> : vector<16x32xf32>
    %272 = tpu.matmul %270, %271, %cst_114 {dimension_numbers = #tpu.dot_dimension_numbers<[1], [0], [0], [1], [0, 0, 1, 1], [], []>} : vector<16x8xf32>, vector<8x32xf32>, vector<16x32xf32> -> vector<16x32xf32>
    %273 = arith.addf %252, %272 : vector<16x32xf32>
    %274 = vector.extract_strided_slice %209 {offsets = [0, 24], sizes = [16, 8], strides = [1, 1]} : vector<16x32xf32> to vector<16x8xf32>
    %275 = vector.extract_strided_slice %210 {offsets = [0, 24], sizes = [16, 8], strides = [1, 1]} : vector<16x32xf32> to vector<16x8xf32>
    %276 = vector.extract_strided_slice %211 {offsets = [0, 24], sizes = [16, 8], strides = [1, 1]} : vector<16x32xf32> to vector<16x8xf32>
    %cst_115 = arith.constant dense<0.000000e+00> : vector<16x16xf32>
    %277 = tpu.matmul %274, %275, %cst_115 {dimension_numbers = #tpu.dot_dimension_numbers<[1], [1], [0], [0], [0, 0, 1, 0], [], []>} : vector<16x8xf32>, vector<16x8xf32>, vector<16x16xf32> -> vector<16x16xf32>
    %cst_116 = arith.constant 0.353553385 : f32
    %278 = vector.broadcast %cst_116 : f32 to vector<16x16xf32>
    %279 = arith.mulf %277, %278 : vector<16x16xf32>
    %280 = arith.addf %279, %23 : vector<16x16xf32>
    %cst_117 = arith.constant dense<0xFF800000> : vector<16xf32>
    %281 = vector.multi_reduction <maximumf>, %280, %cst_117 [1] : vector<16x16xf32> to vector<16xf32>
    %282 = vector.shape_cast %281 : vector<16xf32> to vector<16x1xf32>
    %283 = vector.broadcast %282 : vector<16x1xf32> to vector<16x16xf32>
    %284 = arith.subf %280, %283 : vector<16x16xf32>
    %285 = math.exp %284 : vector<16x16xf32>
    %cst_118 = arith.constant dense<0.000000e+00> : vector<16xf32>
    %286 = vector.multi_reduction <add>, %285, %cst_118 [1] : vector<16x16xf32> to vector<16xf32>
    %287 = vector.shape_cast %286 : vector<16xf32> to vector<16x1xf32>
    %288 = tpu.reciprocal %287 {approx = true} : vector<16x1xf32> -> vector<16x1xf32>
    %289 = vector.broadcast %288 : vector<16x1xf32> to vector<16x16xf32>
    %290 = arith.mulf %285, %289 : vector<16x16xf32>
    %cst_119 = arith.constant dense<0.000000e+00> : vector<16x8xf32>
    %291 = tpu.matmul %290, %276, %cst_119 {dimension_numbers = #tpu.dot_dimension_numbers<[1], [0], [0], [1], [0, 0, 1, 1], [], []>} : vector<16x16xf32>, vector<16x8xf32>, vector<16x8xf32> -> vector<16x8xf32>
    %292 = vector.extract_strided_slice %205 {offsets = [24, 0], sizes = [8, 32], strides = [1, 1]} : vector<32x32xf32> to vector<8x32xf32>
    %cst_120 = arith.constant dense<0.000000e+00> : vector<16x32xf32>
    %293 = tpu.matmul %291, %292, %cst_120 {dimension_numbers = #tpu.dot_dimension_numbers<[1], [0], [0], [1], [0, 0, 1, 1], [], []>} : vector<16x8xf32>, vector<8x32xf32>, vector<16x32xf32> -> vector<16x32xf32>
    %294 = arith.addf %273, %293 : vector<16x32xf32>
    %c1_121 = arith.constant 1 : index
    %c0_122 = arith.constant 0 : index
    %c0_123 = arith.constant 0 : index
    %295 = vector.load %arg7[%c1_121, %c0_122, %c0_123] : memref<2x1x32xf32, #tpu.memory_space<vmem>>, vector<1x1x32xf32>
    %296 = vector.shape_cast %295 : vector<1x1x32xf32> to vector<1x32xf32>
    %297 = vector.broadcast %296 : vector<1x32xf32> to vector<16x32xf32>
    %298 = arith.addf %294, %297 : vector<16x32xf32>
    %299 = arith.addf %298, %199 : vector<16x32xf32>
    %c1_124 = arith.constant 1 : index
    %c0_125 = arith.constant 0 : index
    %c0_126 = arith.constant 0 : index
    %300 = vector.load %arg8[%c1_124, %c0_125, %c0_126] : memref<2x1x32xf32, #tpu.memory_space<vmem>>, vector<1x1x32xf32>
    %301 = vector.shape_cast %300 : vector<1x1x32xf32> to vector<1x32xf32>
    %c1_127 = arith.constant 1 : index
    %c0_128 = arith.constant 0 : index
    %c0_129 = arith.constant 0 : index
    %302 = vector.load %arg9[%c1_127, %c0_128, %c0_129] : memref<2x1x32xf32, #tpu.memory_space<vmem>>, vector<1x1x32xf32>
    %303 = vector.shape_cast %302 : vector<1x1x32xf32> to vector<1x32xf32>
    %cst_130 = arith.constant dense<0.000000e+00> : vector<16xf32>
    %304 = vector.multi_reduction <add>, %299, %cst_130 [1] : vector<16x32xf32> to vector<16xf32>
    %305 = vector.shape_cast %304 : vector<16xf32> to vector<16x1xf32>
    %cst_131 = arith.constant 3.200000e+01 : f32
    %306 = vector.broadcast %cst_131 : f32 to vector<16x1xf32>
    %307 = arith.divf %305, %306 : vector<16x1xf32>
    %308 = vector.broadcast %307 : vector<16x1xf32> to vector<16x32xf32>
    %309 = arith.subf %299, %308 : vector<16x32xf32>
    %310 = arith.mulf %309, %309 : vector<16x32xf32>
    %cst_132 = arith.constant dense<0.000000e+00> : vector<16xf32>
    %311 = vector.multi_reduction <add>, %310, %cst_132 [1] : vector<16x32xf32> to vector<16xf32>
    %312 = vector.shape_cast %311 : vector<16xf32> to vector<16x1xf32>
    %cst_133 = arith.constant 3.200000e+01 : f32
    %313 = vector.broadcast %cst_133 : f32 to vector<16x1xf32>
    %314 = arith.divf %312, %313 : vector<16x1xf32>
    %cst_134 = arith.constant 9.99999996E-13 : f32
    %315 = vector.broadcast %cst_134 : f32 to vector<16x1xf32>
    %316 = arith.addf %314, %315 : vector<16x1xf32>
    %317 = math.rsqrt %316 : vector<16x1xf32>
    %318 = vector.broadcast %317 : vector<16x1xf32> to vector<16x32xf32>
    %319 = arith.mulf %309, %318 : vector<16x32xf32>
    %320 = vector.broadcast %301 : vector<1x32xf32> to vector<16x32xf32>
    %321 = arith.mulf %319, %320 : vector<16x32xf32>
    %322 = vector.broadcast %303 : vector<1x32xf32> to vector<16x32xf32>
    %323 = arith.addf %321, %322 : vector<16x32xf32>
    %c1_135 = arith.constant 1 : index
    %c0_136 = arith.constant 0 : index
    %c0_137 = arith.constant 0 : index
    %324 = vector.load %arg10[%c1_135, %c0_136, %c0_137] : memref<2x32x64xf32, #tpu.memory_space<vmem>>, vector<1x32x64xf32>
    %325 = vector.shape_cast %324 : vector<1x32x64xf32> to vector<32x64xf32>
    %cst_138 = arith.constant dense<0.000000e+00> : vector<16x64xf32>
    %326 = tpu.matmul %323, %325, %cst_138 {dimension_numbers = #tpu.dot_dimension_numbers<[1], [0], [0], [1], [0, 0, 1, 1], [], []>} : vector<16x32xf32>, vector<32x64xf32>, vector<16x64xf32> -> vector<16x64xf32>
    %c1_139 = arith.constant 1 : index
    %c0_140 = arith.constant 0 : index
    %c0_141 = arith.constant 0 : index
    %327 = vector.load %arg11[%c1_139, %c0_140, %c0_141] : memref<2x1x64xf32, #tpu.memory_space<vmem>>, vector<1x1x64xf32>
    %328 = vector.shape_cast %327 : vector<1x1x64xf32> to vector<1x64xf32>
    %329 = vector.broadcast %328 : vector<1x64xf32> to vector<16x64xf32>
    %330 = arith.addf %326, %329 : vector<16x64xf32>
    %cst_142 = arith.constant 5.000000e-01 : f32
    %331 = vector.broadcast %cst_142 : f32 to vector<16x64xf32>
    %332 = arith.mulf %331, %330 : vector<16x64xf32>
    %cst_143 = arith.constant 4.471500e-02 : f32
    %333 = vector.broadcast %cst_143 : f32 to vector<16x64xf32>
    %334 = arith.mulf %333, %330 : vector<16x64xf32>
    %335 = arith.mulf %334, %330 : vector<16x64xf32>
    %336 = arith.mulf %335, %330 : vector<16x64xf32>
    %337 = arith.addf %330, %336 : vector<16x64xf32>
    %cst_144 = arith.constant 0.797884583 : f32
    %338 = vector.broadcast %cst_144 : f32 to vector<16x64xf32>
    %339 = arith.mulf %338, %337 : vector<16x64xf32>
    %340 = math.tanh %339 : vector<16x64xf32>
    %cst_145 = arith.constant 1.000000e+00 : f32
    %341 = vector.broadcast %cst_145 : f32 to vector<16x64xf32>
    %342 = arith.addf %341, %340 : vector<16x64xf32>
    %343 = arith.mulf %332, %342 : vector<16x64xf32>
    %c1_146 = arith.constant 1 : index
    %c0_147 = arith.constant 0 : index
    %c0_148 = arith.constant 0 : index
    %344 = vector.load %arg12[%c1_146, %c0_147, %c0_148] : memref<2x64x32xf32, #tpu.memory_space<vmem>>, vector<1x64x32xf32>
    %345 = vector.shape_cast %344 : vector<1x64x32xf32> to vector<64x32xf32>
    %cst_149 = arith.constant dense<0.000000e+00> : vector<16x32xf32>
    %346 = tpu.matmul %343, %345, %cst_149 {dimension_numbers = #tpu.dot_dimension_numbers<[1], [0], [0], [1], [0, 0, 1, 1], [], []>} : vector<16x64xf32>, vector<64x32xf32>, vector<16x32xf32> -> vector<16x32xf32>
    %c1_150 = arith.constant 1 : index
    %c0_151 = arith.constant 0 : index
    %c0_152 = arith.constant 0 : index
    %347 = vector.load %arg13[%c1_150, %c0_151, %c0_152] : memref<2x1x32xf32, #tpu.memory_space<vmem>>, vector<1x1x32xf32>
    %348 = vector.shape_cast %347 : vector<1x1x32xf32> to vector<1x32xf32>
    %349 = vector.broadcast %348 : vector<1x32xf32> to vector<16x32xf32>
    %350 = arith.addf %346, %349 : vector<16x32xf32>
    %351 = arith.addf %350, %323 : vector<16x32xf32>
    %c1_153 = arith.constant 1 : index
    %c0_154 = arith.constant 0 : index
    %c0_155 = arith.constant 0 : index
    %352 = vector.load %arg14[%c1_153, %c0_154, %c0_155] : memref<2x1x32xf32, #tpu.memory_space<vmem>>, vector<1x1x32xf32>
    %353 = vector.shape_cast %352 : vector<1x1x32xf32> to vector<1x32xf32>
    %c1_156 = arith.constant 1 : index
    %c0_157 = arith.constant 0 : index
    %c0_158 = arith.constant 0 : index
    %354 = vector.load %arg15[%c1_156, %c0_157, %c0_158] : memref<2x1x32xf32, #tpu.memory_space<vmem>>, vector<1x1x32xf32>
    %355 = vector.shape_cast %354 : vector<1x1x32xf32> to vector<1x32xf32>
    %cst_159 = arith.constant dense<0.000000e+00> : vector<16xf32>
    %356 = vector.multi_reduction <add>, %351, %cst_159 [1] : vector<16x32xf32> to vector<16xf32>
    %357 = vector.shape_cast %356 : vector<16xf32> to vector<16x1xf32>
    %cst_160 = arith.constant 3.200000e+01 : f32
    %358 = vector.broadcast %cst_160 : f32 to vector<16x1xf32>
    %359 = arith.divf %357, %358 : vector<16x1xf32>
    %360 = vector.broadcast %359 : vector<16x1xf32> to vector<16x32xf32>
    %361 = arith.subf %351, %360 : vector<16x32xf32>
    %362 = arith.mulf %361, %361 : vector<16x32xf32>
    %cst_161 = arith.constant dense<0.000000e+00> : vector<16xf32>
    %363 = vector.multi_reduction <add>, %362, %cst_161 [1] : vector<16x32xf32> to vector<16xf32>
    %364 = vector.shape_cast %363 : vector<16xf32> to vector<16x1xf32>
    %cst_162 = arith.constant 3.200000e+01 : f32
    %365 = vector.broadcast %cst_162 : f32 to vector<16x1xf32>
    %366 = arith.divf %364, %365 : vector<16x1xf32>
    %cst_163 = arith.constant 9.99999996E-13 : f32
    %367 = vector.broadcast %cst_163 : f32 to vector<16x1xf32>
    %368 = arith.addf %366, %367 : vector<16x1xf32>
    %369 = math.rsqrt %368 : vector<16x1xf32>
    %370 = vector.broadcast %369 : vector<16x1xf32> to vector<16x32xf32>
    %371 = arith.mulf %361, %370 : vector<16x32xf32>
    %372 = vector.broadcast %353 : vector<1x32xf32> to vector<16x32xf32>
    %373 = arith.mulf %371, %372 : vector<16x32xf32>
    %374 = vector.broadcast %355 : vector<1x32xf32> to vector<16x32xf32>
    %375 = arith.addf %373, %374 : vector<16x32xf32>
    %376 = vector.extract_strided_slice %375 {offsets = [0, 0], sizes = [1, 32], strides = [1, 1]} : vector<16x32xf32> to vector<1x32xf32>
    %377 = vector.extract_strided_slice %375 {offsets = [8, 0], sizes = [1, 32], strides = [1, 1]} : vector<16x32xf32> to vector<1x32xf32>
    %378 = tpu.concatenate %376, %377 in 0 : vector<1x32xf32>, vector<1x32xf32> -> vector<2x32xf32>
    %c0_164 = arith.constant 0 : index
    %c0_165 = arith.constant 0 : index
    %379 = vector.load %arg16[%c0_164, %c0_165] : memref<32x32xf32, #tpu.memory_space<vmem>>, vector<32x32xf32>
    %cst_166 = arith.constant dense<0.000000e+00> : vector<2x32xf32>
    %380 = tpu.matmul %378, %379, %cst_166 {dimension_numbers = #tpu.dot_dimension_numbers<[1], [0], [0], [1], [0, 0, 1, 1], [], []>} : vector<2x32xf32>, vector<32x32xf32>, vector<2x32xf32> -> vector<2x32xf32>
    %c0_167 = arith.constant 0 : index
    %c0_168 = arith.constant 0 : index
    %381 = vector.load %arg17[%c0_167, %c0_168] : memref<1x32xf32, #tpu.memory_space<vmem>>, vector<1x32xf32>
    %382 = vector.broadcast %381 : vector<1x32xf32> to vector<2x32xf32>
    %383 = arith.addf %380, %382 : vector<2x32xf32>
    %384 = math.tanh %383 : vector<2x32xf32>
    %c0_169 = arith.constant 0 : index
    %c0_170 = arith.constant 0 : index
    %385 = vector.load %arg18[%c0_169, %c0_170] : memref<32x1xf32, #tpu.memory_space<vmem>>, vector<32x1xf32>
    %cst_171 = arith.constant dense<0.000000e+00> : vector<2x1xf32>
    %386 = tpu.matmul %384, %385, %cst_171 {dimension_numbers = #tpu.dot_dimension_numbers<[1], [0], [0], [1], [0, 0, 1, 1], [], []>} : vector<2x32xf32>, vector<32x1xf32>, vector<2x1xf32> -> vector<2x1xf32>
    %c0_172 = arith.constant 0 : index
    %c0_173 = arith.constant 0 : index
    %387 = vector.load %arg19[%c0_172, %c0_173] : memref<1x1xf32, #tpu.memory_space<vmem>>, vector<1x1xf32>
    %388 = vector.broadcast %387 : vector<1x1xf32> to vector<2x1xf32>
    %389 = arith.addf %386, %388 : vector<2x1xf32>
    %cst_174 = arith.constant 0.000000e+00 : f32
    %390 = vector.broadcast %cst_174 : f32 to vector<2x1xf32>
    %391 = arith.subf %390, %389 : vector<2x1xf32>
    %392 = math.exp %391 : vector<2x1xf32>
    %cst_175 = arith.constant 1.000000e+00 : f32
    %393 = vector.broadcast %cst_175 : f32 to vector<2x1xf32>
    %394 = arith.addf %393, %392 : vector<2x1xf32>
    %cst_176 = arith.constant 1.000000e+00 : f32
    %395 = vector.broadcast %cst_176 : f32 to vector<2x1xf32>
    %396 = arith.divf %395, %394 : vector<2x1xf32>
    %c0_177 = arith.constant 0 : index
    %c0_178 = arith.constant 0 : index
    %397 = vector.load %arg20[%c0_177, %c0_178] : memref<2x1xf32, #tpu.memory_space<vmem>>, vector<2x1xf32>
    tpu.vector_store %arg20[%c0_177, %c0_178], %396 {strides = array<i32>} : memref<2x1xf32, #tpu.memory_space<vmem>>, vector<2x1xf32>,
    return
  }
}

</mosaic_0001>

<bundles_post_ra>
// kernel: tpu_custom_call.1
= control target key start
LH: loop header
LB: loop body
LE: loop exit
PB: predicated region body
PF: predicated region fallthrough
CT: control target
= control target key end

     0   :  { %s4824_s0 = inlined_call_operand.hbm [shape: f32[16,32], index: 0, kind: input, shape index: {}]   ;;  %s4825_s1 = inlined_call_operand.hbm [shape: f32[16,16], index: 1, kind: input, shape index: {}]   ;;  %s4826_s2 = inlined_call_operand.hbm [shape: f32[1,32], index: 2, kind: input, shape index: {}]   ;;  %s4827_s3 = inlined_call_operand.hbm [shape: f32[1,32], index: 3, kind: input, shape index: {}]   ;;  %s4828_s4 = inlined_call_operand.vmem [shape: f32[2,32,96], index: 4, kind: input, shape index: {}]   ;;  %s4829_s5 = inlined_call_operand.vmem [shape: f32[2,1,96], index: 5, kind: input, shape index: {}]   ;;  %s4830_s6 = inlined_call_operand.vmem [shape: f32[2,32,32], index: 6, kind: input, shape index: {}]   ;;  %s4831_s7 = inlined_call_operand.vmem [shape: f32[2,1,32], index: 7, kind: input, shape index: {}]   ;;  %s4832_s8 = inlined_call_operand.vmem [shape: f32[2,1,32], index: 8, kind: input, shape index: {}]   ;;  %s4833_s9 = inlined_call_operand.vmem [shape: f32[2,1,32], index: 9, kind: input, shape index: {}]   ;;  %s4834_s10 = inlined_call_operand.vmem [shape: f32[2,32,64], index: 10, kind: input, shape index: {}]   ;;  %s4835_s11 = inlined_call_operand.vmem [shape: f32[2,1,64], index: 11, kind: input, shape index: {}]   ;;  %s4836_s12 = inlined_call_operand.vmem [shape: f32[2,64,32], index: 12, kind: input, shape index: {}]   ;;  %s4837_s13 = inlined_call_operand.vmem [shape: f32[2,1,32], index: 13, kind: input, shape index: {}]   ;;  %s4838_s14 = inlined_call_operand.vmem [shape: f32[2,1,32], index: 14, kind: input, shape index: {}]   ;;  %s4839_s15 = inlined_call_operand.vmem [shape: f32[2,1,32], index: 15, kind: input, shape index: {}]   ;;  %s4840_s16 = inlined_call_operand.vmem [shape: f32[32,32], index: 16, kind: input, shape index: {}]   ;;  %s4841_s17 = inlined_call_operand.vmem [shape: f32[1,32], index: 17, kind: input, shape index: {}]   ;;  %s4842_s18 = inlined_call_operand.vmem [shape: f32[32,1], index: 18, kind: input, shape index: {}]   ;;  %s4843_s19 = inlined_call_operand.<no memory space> [shape: f32[1,1], index: 19, kind: input, shape index: {}]   ;;  %s4844_s20 = inlined_call_operand.vmem [shape: f32[2,1], index: 20, kind: output, shape index: {}]  }
   0x1   :  { %4854 = sst [smem:[#allocation13_spill]] %s4824_s0  ;;  %v25_v0 = vstv %s4843_s19 }
   0x2   :  { %4855 = sst [smem:[#allocation14_spill]] %s4825_s1  ;;  %26 = vst [vmem:[#allocation2] sm:$0x1] %v25_v0 }
   0x3   :  { %4856 = sst [smem:[#allocation15_spill]] %s4826_s2 }
   0x4   :  { %4857 = sst [smem:[#allocation16_spill]] %s4827_s3 }
   0x5   :  { %4858 = sst [smem:[#allocation17_spill]] %s4828_s4 }
   0x6   :  { %27 = vsyncpa [#allocation4], 0 }
   0x7   :  { %28 = vsyncpa [#allocation6], 0 }
   0x8   :  { %29 = vsyncpa [#allocation9], 0  ;;  %s4191_s23 = smov [#allocation5]   ;;  %s4192_s2 = smov [#allocation3]  }
   0x9   :  { %s47_s24 = sshll.u32 %s4191_s23, 4  ;;  %s35_s25 = sshll.u32 %s4192_s2, 4  ;;  %s48_s24 = int_to_ptr.vmem [resolvable:$true] %s47_s24  ;;  %s36_s25 = int_to_ptr.vmem [resolvable:$true] %s35_s25 }
   0xa   :  { %s4113_s3 = scalar_lea.vmem %s48_s24, 256  ;;  %p4118_p1 = scmp.lt.s32.totalorder %s48_s24, %s48_s24 }
   0xb   :  { %p4114_p0 = scmp.ne.s32.totalorder %s48_s24, %s4113_s3  ;;  %p4119_p2 = scmp.lt.s32.totalorder %s4113_s3, %s4113_s3 }
   0xd   :  { %p4120_p3 = por %p4119_p2, %p4118_p1 }
   0xf   :  { %p4121_p4 = pnand %p4120_p3, %p4114_p0 }
  0x11   :  { %4124 = shalt.err (!%p4121_p4)
}
  0x12   :  { %s4193_s26 = smov 128   ;;  %s4194_s27 = smov 8  }
  0x13   :  { %s4859_s4 = sld [smem:[#allocation14_spill]]  ;;  %s4133_s29 = scalar_lea.vmem %s36_s25, 256 }
  0x14   :  { %p4134_p5 = scmp.ne.s32.totalorder %s36_s25, %s4133_s29  ;;  %p4138_p6 = scmp.lt.s32.totalorder %s36_s25, %s36_s25 }
  0x15   :  { %p4139_p7 = scmp.lt.s32.totalorder %s4133_s29, %s4133_s29 }
  0x17   :  { %p4140_p8 = por %p4139_p7, %p4138_p6 }
  0x19   :  { %53 = dma.hbm_to_vmem [thread:$0]  %s4859_s4, 256, %s48_s24, [#allocation6], %s4193_s26, %s4193_s26, %s4194_s27  }
  0x1a   :  { %p4141_p9 = pnand %p4140_p8, %p4134_p5 }
  0x1c   :  { %4144 = shalt.err (!%p4141_p9)
}
  0x1d   :  { %s4860_s21 = sld [smem:[#allocation13_spill]]  ;;  %s4195_s1 = smov [#allocation7]  }
  0x1e   :  { %s60_s22 = sshll.u32 %s4195_s1, 4  ;;  %s4196_s23 = smov [#allocation8]   ;;  %s61_s22 = int_to_ptr.vmem [resolvable:$true] %s60_s22 }
  0x1f   :  { %s70_s2 = sshll.u32 %s4196_s23, 4  ;;  %s4153_s3 = scalar_lea.vmem %s61_s22, 16  ;;  %s71_s2 = int_to_ptr.vmem [resolvable:$true] %s70_s2 }
  0x20   :  { %p4154_p10 = scmp.ne.s32.totalorder %s61_s22, %s4153_s3  ;;  %s4157_s24 = scalar_lea.vmem %s61_s22, 32 }
  0x21   :  { %p4158_p11 = scmp.lt.s32.totalorder %s61_s22, %s61_s22  ;;  %p4159_p12 = scmp.lt.s32.totalorder %s4157_s24, %s4153_s3 }
  0x23   :  { %41 = dma.hbm_to_vmem [thread:$0]  %s4860_s21, 256, %s36_s25, [#allocation4], %s4193_s26, %s4193_s26, %s4194_s27  }
  0x24   :  { %p4160_p13 = por %p4159_p12, %p4158_p11 }
  0x26   :  { %p4161_p0 = pnand %p4160_p13, %p4154_p10 }
  0x28   :  { %4164 = shalt.err (!%p4161_p0)
}
  0x29   :  { %s4861_s4 = sld [smem:[#allocation15_spill]]  ;;  %s4173_s29 = scalar_lea.vmem %s71_s2, 16 }
  0x2a   :  { %p4174_p1 = scmp.ne.s32.totalorder %s71_s2, %s4173_s29  ;;  %s4177_s25 = scalar_lea.vmem %s71_s2, 32 }
  0x2b   :  { %p4178_p2 = scmp.lt.s32.totalorder %s71_s2, %s71_s2  ;;  %p4179_p3 = scmp.lt.s32.totalorder %s4177_s25, %s4173_s29 }
  0x2d   :  { %p4180_p4 = por %p4179_p3, %p4178_p2 }
  0x2f   :  { %63 = dma.hbm_to_vmem [thread:$0]  %s4861_s4, 16, %s61_s22, [#allocation6]  }
  0x30   :  { %p4181_p5 = pnand %p4180_p4, %p4174_p1 }
  0x32   :  { %4184 = shalt.err (!%p4181_p5)
}
  0x33   :  { %s4862_s30 = sld [smem:[#allocation16_spill]] }
  0x39   :  { %73 = dma.hbm_to_vmem [thread:$0]  %s4862_s30, 16, %s71_s2, [#allocation9]  }
  0x3a   :  { %4185 = dma.done.wait [#allocation4], 256  }
  0x3b   :  { %4186 = vsyncadd [#allocation4], 4294967040 }
  0x3c   :  { %4187 = dma.done.wait [#allocation6], 272  }
  0x3d   :  { %4188 = vsyncadd [#allocation6], 4294967024 }
  0x3e   :  { %4189 = dma.done.wait [#allocation9], 16  }
  0x3f   :  { %4190 = vsyncadd [#allocation9], 4294967280  ;;  %vm122_vm0 = vcmask 261120   ;;  %v118_v1 = vld [vmem:[#allocation3] sm:$0xff]  ;;  %v119_v2 = vld [vmem:[#allocation3 + $0x8] sm:$0xff]  ;;  %s4863_s1 = sld [smem:[#allocation17_spill]] }
  0x40   :  { %v123_v3 = vsel %vm122_vm0, %v118_v1, 0.0  ;;  %v126_v4 = vsel %vm122_vm0, %v119_v2, 0.0  ;;  %v3462_v26 = vld [vmem:[#allocation7] ss:$0 sm:$0xff]  ;;  %v3463_v28 = vld [vmem:[#allocation8] ss:$0 sm:$0xff] }
  0x41   :  { %124 = vadd.xlane.f32.xlu0 %v123_v3  ;;  %v3464_v35 = vld [vmem:[%s4829_s5] ss:$0 sm:$0xff]  ;;  %vm270_vm1 = vcmask 64512   ;;  %s4197_s29 = smov 96   ;;  %vm358_vm2 = vcmask 130048   ;;  %v4375_v46 = vld [vmem:[#allocation5] sm:$0xff] }
  0x42   :  { %v4373_v43 = vld [vmem:[#allocation5 + $0x8] sm:$0xff]  ;;  %s4198_s25 = smov 64   ;;  %s4199_s26 = smov 88   ;;  %vm1588_vm3 = vcmask 523264   ;;  %vm4209_vm4 = vmmov 0   ;;  %vm3276_vm5 = vcmask 1040384  }
  0x43   :  { %s4200_s27 = smov 120   ;;  %s4201_s21 = smov 56   ;;  %vm3453_vm6 = vcmask 1024  }
  0x44   :  { %s4202_s22 = smov 80   ;;  %s4203_s23 = smov 112  }
  0x45   :  { %127 = vadd.xlane.f32.xlu0 %v126_v4  ;;  %v171_v15 = vld [vmem:[%s4863_s1 + $0x18] sm:$0xff]  ;;  %v170_v16 = vld [vmem:[%s4863_s1 + $0x10] sm:$0xff]  ;;  %v169_v17 = vld [vmem:[%s4863_s1 + $0x8] sm:$0xff]  ;;  %s4852_s2 = smov 72   ;;  %s4850_s3 = smov 104  }
  0x46   :  { %3730 = vmatprep.subr.mxu0 %v171_v15  ;;  %v168_v18 = vld [vmem:[%s4863_s1] sm:$0xff]  ;;  %s4848_s28 = smov 48   ;;  %s4846_s4 = smov 40  }
  0x47   :  { %3731 = vmatpush3.msra.mxu0 %v171_v15 }
  0x48   :  { %3732 = vmatprep.subr.mxu0 %v170_v16 }
  0x49   :  { %3733 = vmatpush3.msra.mxu0 %v170_v16 }
  0x4a   :  { %3734 = vmatprep.subr.mxu0 %v169_v17 }
  0x4b   :  { %3735 = vmatpush3.msra.mxu0 %v169_v17 }
  0x4c   :  { %3736 = vmatprep.subr.mxu0 %v168_v18 }
  0x4d   :  { %3737 = vmatpush3.msra.mxu0 %v168_v18 }
  0xca   :  { %v125_v5 = vpop.xlane.xlu0 %124 }
  0xcb   :  { %v130_v6 = vmul.f32 0.03125, %v125_v5 }
  0xcd   :  { %v132_v7 = vsub.f32 %v118_v1, %v130_v6 }
  0xce   :  { %v128_v8 = vpop.xlane.xlu0 %127 }
  0xcf   :  { %v131_v9 = vmul.f32 0.03125, %v128_v8  ;;  %v134_v10 = vmul.f32 %v132_v7, %v132_v7 }
  0xd1   :  { %v133_v11 = vsub.f32 %v119_v2, %v131_v9  ;;  %v136_v12 = vsel %vm122_vm0, %v134_v10, 0.0  ;;  %v173_v10 = vld [vmem:[%s4830_s6] sm:$0xff] }
  0xd2   :  { %137 = vadd.xlane.f32.xlu1 %v136_v12 }
  0xd3   :  { %v135_v13 = vmul.f32 %v133_v11, %v133_v11 }
  0xd5   :  { %v139_v14 = vsel %vm122_vm0, %v135_v13, 0.0 }
  0xd6   :  { %140 = vadd.xlane.f32.xlu1 %v139_v14 }
 0x15b   :  { %v138_v19 = vpop.xlane.xlu1 %137 }
 0x15c   :  { %v142_v20 = vmul.f32 0.03125, %v138_v19 }
 0x15e   :  { %v144_v21 = vadd.f32 1e-12, %v142_v20 }
 0x15f   :  { %v141_v22 = vpop.xlane.xlu1 %140 }
 0x160   :  { %4005 = vrsqrt.f32 %v144_v21  ;;  %v143_v23 = vmul.f32 0.03125, %v141_v22 }
 0x162   :  { %v145_v24 = vadd.f32 1e-12, %v143_v23 }
 0x164   :  { %4007 = vrsqrt.f32 %v145_v24 }
 0x16d   :  { %v4006_v25 = vpop.eup %4005 }
 0x16e   :  { %v148_v27 = vmul.f32 %v4006_v25, %v132_v7 }
 0x170   :  { %v156_v29 = vmul.f32 %v3462_v26, %v148_v27 }
 0x171   :  { %v4008_v30 = vpop.eup %4007 }
 0x172   :  { %v149_v31 = vmul.f32 %v4008_v30, %v133_v11  ;;  %v4346_v32 = vadd.f32 %v3463_v28, %v156_v29 }
 0x174   :  { %v157_v33 = vmul.f32 %v3462_v26, %v149_v31  ;;  %3738 = vmatprep.mubr.msk.f32.mxu0 %vm122_vm0, %v4346_v32 }
 0x176   :  { %v4350_v34 = vadd.f32 %v3463_v28, %v157_v33 }
 0x178   :  { %3739 = vmatmul.mubr.msk.f32.vlgmr.msra.gmra.mxu0 %vm122_vm0, %v4350_v34 }
 0x238   :  { %v3740_v36 = vpop.f32.mrf.mxu0 }
 0x239   :  { %v4357_v37 = vadd.f32 %v3740_v36, %v3464_v35 }
 0x23a   :  { %v255_v38 = vpop.f32.mrf.mxu0 }
 0x23b   :  { %v4359_v39 = vadd.f32 %v3464_v35, %v255_v38  ;;  %268 = vrot.lane.b32.xlu0 %v4357_v37, %s4197_s29  ;;  %v174_v38 = vld [vmem:[%s4830_s6 + $0x8] sm:$0xff] }
 0x23d   :  { %266 = vrot.lane.b32.xlu1 %v4359_v39, %s4197_s29  ;;  %3745 = vmatprep.mubr.msk.f32.mxu1 %vm270_vm1, %v4359_v39 }
 0x2ad   :  { %v269_v40 = vpop.permute.xlu0 %268 }
 0x2ae   :  { %3741 = vmatprep.subr.msk.mxu1 %vm270_vm1, %v269_v40 }
 0x2af   :  { %3742 = vmatpush3.xpose.msk.msra.mxu1 %vm270_vm1, %v269_v40  ;;  %v267_v41 = vpop.permute.xlu1 %266 }
 0x2b0   :  { %3743 = vmatprep.subr.msk.mxu1 %vm270_vm1, %v267_v41 }
 0x2b3   :  { %3744 = vmatpush3.xpose.msk.msra.mxu1 %vm270_vm1, %v267_v41 }
 0x2b6   :  { %3746 = vmatmul.mubr.msk.f32.vlgmr.msra.gmra.mxu1 %vm270_vm1, %v4357_v37 }
 0x376   :  { %v3747_v42 = vpop.f32.mrf.mxu1 }
 0x377   :  { %v355_v44 = vmul.f32 0.35355338, %v3747_v42 }
 0x378   :  { %v345_v45 = vpop.f32.mrf.mxu1 }
 0x379   :  { %v354_v47 = vmul.f32 0.35355338, %v345_v45  ;;  %v357_v48 = vadd.f32 %v355_v44, %v4373_v43 }
 0x37b   :  { %v362_v49 = vsel %vm358_vm2, %v357_v48, -inf  ;;  %v356_v50 = vadd.f32 %v354_v47, %v4375_v46 }
 0x37c   :  { %363 = vmax.xlane.f32.xlu0 %v362_v49 }
 0x37d   :  { %v359_v51 = vsel %vm358_vm2, %v356_v50, -inf }
 0x37e   :  { %360 = vmax.xlane.f32.xlu1 %v359_v51 }
 0x405   :  { %v364_v52 = vpop.xlane.xlu0 %363 }
 0x406   :  { %v366_v53 = vsub.f32 %v357_v48, %v364_v52 }
 0x407   :  { %v361_v54 = vpop.xlane.xlu1 %360 }
 0x408   :  { %v369_v55 = vmul.f32 1.442695, %v366_v53  ;;  %v365_v56 = vsub.f32 %v356_v50, %v361_v54 }
 0x40a   :  { %4009 = vpow2.f32 %v369_v55  ;;  %v367_v57 = vmul.f32 1.442695, %v365_v56 }
 0x40c   :  { %4011 = vpow2.f32 %v367_v57 }
 0x417   :  { %v4010_v58 = vpop.eup %4009 }
 0x418   :  { %v374_v59 = vsel %vm358_vm2, %v4010_v58, 0.0 }
 0x419   :  { %v4012_v60 = vpop.eup %4011  ;;  %375 = vadd.xlane.f32.xlu1 %v374_v59 }
 0x41a   :  { %v371_v61 = vsel %vm358_vm2, %v4012_v60, 0.0 }
 0x41b   :  { %372 = vadd.xlane.f32.xlu0 %v371_v61 }
 0x42a   :  { %381 = vrot.lane.b32.xlu1 %v4359_v39, %s4198_s25 }
 0x42e   :  { %474 = vrot.lane.b32.xlu1 %v4357_v37, %s4199_s26 }
 0x431   :  { %383 = vrot.lane.b32.xlu0 %v4357_v37, %s4198_s25 }
 0x432   :  { %472 = vrot.lane.b32.xlu1 %v4359_v39, %s4199_s26 }
 0x435   :  { %468 = vrot.lane.b32.xlu0 %v4359_v39, %s4200_s27 }
 0x436   :  { %470 = vrot.lane.b32.xlu1 %v4357_v37, %s4200_s27 }
 0x4a2   :  { %v376_v62 = vpop.xlane.xlu1 %375 }
 0x4a3   :  { %4013 = vrcp.f32 %v376_v62 }
 0x4a4   :  { %v373_v63 = vpop.xlane.xlu0 %372 }
 0x4a5   :  { %4015 = vrcp.f32 %v373_v63 }
 0x4a6   :  { %v382_v0 = vpop.permute.xlu1 %381 }
 0x4a8   :  { %v384_v1 = vpop.permute.xlu0 %383 }
 0x4a9   :  { %3748 = vmatprep.subr.mxu1 %v384_v1 }
 0x4aa   :  { %3749 = vmatpush3.msra.mxu1 %v384_v1  ;;  %v475_v2 = vpop.permute.xlu1 %474 }
 0x4ab   :  { %3750 = vmatprep.subr.mxu1 %v382_v0 }
 0x4ac   :  { %3751 = vmatpush3.msra.mxu1 %v382_v0  ;;  %v469_v7 = vpop.permute.xlu0 %468 }
 0x4ad   :  { %3755 = vmatprep.subr.msk.mxu1 %vm270_vm1, %v475_v2 }
 0x4ae   :  { %v473_v8 = vpop.permute.xlu1 %472 }
 0x4b0   :  { %v4014_v3 = vpop.eup %4013 }
 0x4b1   :  { %v380_v6 = vmul.f32 %v4014_v3, %v4010_v58 }
 0x4b2   :  { %v4016_v4 = vpop.eup %4015  ;;  %v471_v9 = vpop.permute.xlu1 %470 }
 0x4b3   :  { %v379_v5 = vmul.f32 %v4016_v4, %v4012_v60 }
 0x4b5   :  { %3752 = vmatprep.mubr.msk.f32.mxu1 %vm358_vm2, %v379_v5 }
 0x4b6   :  { %3753 = vmatmul.mubr.msk.f32.vlgmr.msra.gmra.mxu1 %vm358_vm2, %v380_v6 }
 0x4b7   :  { %3756 = vmatpush3.xpose.msk.msra.mxu1 %vm270_vm1, %v475_v2  ;;  %3759 = vmatprep.mubr.msk.f32.mxu1 %vm270_vm1, %v469_v7 }
 0x4b8   :  { %3757 = vmatprep.subr.msk.mxu1 %vm270_vm1, %v473_v8 }
 0x4bb   :  { %3758 = vmatpush3.xpose.msk.msra.mxu1 %vm270_vm1, %v473_v8 }
 0x4bc   :  { %3774 = vmatprep.subr.mxu1 %v173_v10 }
 0x4be   :  { %3760 = vmatmul.mubr.msk.f32.vlgmr.msra.gmra.mxu1 %vm270_vm1, %v471_v9 }
 0x4bf   :  { %3775 = vmatpush3.msra.mxu1 %v173_v10 }
 0x576   :  { %v3754_v11 = vpop.f32.mrf.mxu1 }
 0x578   :  { %v459_v12 = vpop.f32.mrf.mxu1 }
 0x579   :  { %3776 = vmatprep.mubr.msk.f32.mxu1 %vm270_vm1, %v459_v12 }
 0x57a   :  { %3777 = vmatmul.mubr.msk.f32.vlgmr.msra.gmra.mxu1 %vm270_vm1, %v3754_v11 }
 0x57e   :  { %v3761_v13 = vpop.f32.mrf.mxu1 }
 0x57f   :  { %v560_v14 = vmul.f32 0.35355338, %v3761_v13 }
 0x580   :  { %v550_v15 = vpop.f32.mrf.mxu1 }
 0x581   :  { %v559_v16 = vmul.f32 0.35355338, %v550_v15  ;;  %v562_v17 = vadd.f32 %v560_v14, %v4373_v43 }
 0x583   :  { %v566_v18 = vsel %vm358_vm2, %v562_v17, -inf  ;;  %v561_v19 = vadd.f32 %v559_v16, %v4375_v46 }
 0x584   :  { %567 = vmax.xlane.f32.xlu1 %v566_v18 }
 0x585   :  { %v563_v20 = vsel %vm358_vm2, %v561_v19, -inf }
 0x586   :  { %564 = vmax.xlane.f32.xlu0 %v563_v20 }
 0x595   :  { %585 = vrot.lane.b32.xlu1 %v4359_v39, %s4201_s21 }
 0x599   :  { %840 = vrot.lane.b32.xlu1 %v4357_v37, %s4202_s22 }
 0x59d   :  { %838 = vrot.lane.b32.xlu1 %v4359_v39, %s4202_s22 }
 0x5a1   :  { %836 = vrot.lane.b32.xlu1 %v4357_v37, %s4203_s23 }
 0x5a5   :  { %1125 = vrot.lane.b32.xlu1 %v4359_v39, %s4852_s2 }
 0x5a9   :  { %1123 = vrot.lane.b32.xlu1 %v4357_v37, %s4850_s3 }
 0x60d   :  { %v568_v21 = vpop.xlane.xlu1 %567 }
 0x60e   :  { %v570_v22 = vsub.f32 %v562_v17, %v568_v21 }
 0x60f   :  { %v565_v23 = vpop.xlane.xlu0 %564 }
 0x610   :  { %v573_v24 = vmul.f32 1.442695, %v570_v22  ;;  %v569_v25 = vsub.f32 %v561_v19, %v565_v23 }
 0x611   :  { %v586_v36 = vpop.permute.xlu1 %585 }
 0x612   :  { %4017 = vpow2.f32 %v573_v24  ;;  %v571_v26 = vmul.f32 1.442695, %v569_v25 }
 0x614   :  { %4019 = vpow2.f32 %v571_v26 }
 0x615   :  { %v841_v45 = vpop.permute.xlu1 %840 }
 0x619   :  { %v839_v49 = vpop.permute.xlu1 %838 }
 0x61d   :  { %v837_v52 = vpop.permute.xlu1 %836 }
 0x61f   :  { %v4018_v27 = vpop.eup %4017 }
 0x620   :  { %v578_v28 = vsel %vm358_vm2, %v4018_v27, 0.0 }
 0x621   :  { %v4020_v29 = vpop.eup %4019  ;;  %579 = vadd.xlane.f32.xlu0 %v578_v28  ;;  %v1126_v54 = vpop.permute.xlu1 %1125 }
 0x622   :  { %v575_v30 = vsel %vm358_vm2, %v4020_v29, 0.0 }
 0x625   :  { %576 = vadd.xlane.f32.xlu0 %v575_v30  ;;  %v1124_v55 = vpop.permute.xlu1 %1123 }
 0x63b   :  { %587 = vrot.lane.b32.xlu0 %v4357_v37, %s4201_s21 }
 0x63f   :  { %834 = vrot.lane.b32.xlu0 %v4359_v39, %s4203_s23 }
 0x643   :  { %1127 = vrot.lane.b32.xlu0 %v4357_v37, %s4852_s2 }
 0x647   :  { %1121 = vrot.lane.b32.xlu0 %v4359_v39, %s4850_s3 }
 0x6aa   :  { %v580_v31 = vpop.xlane.xlu0 %579 }
 0x6ab   :  { %4021 = vrcp.f32 %v580_v31 }
 0x6ae   :  { %v577_v33 = vpop.xlane.xlu0 %576 }
 0x6af   :  { %4023 = vrcp.f32 %v577_v33 }
 0x6b2   :  { %v588_v35 = vpop.permute.xlu0 %587 }
 0x6b3   :  { %3762 = vmatprep.subr.mxu0 %v588_v35 }
 0x6b4   :  { %3763 = vmatpush3.msra.mxu0 %v588_v35 }
 0x6b5   :  { %3764 = vmatprep.subr.mxu0 %v586_v36 }
 0x6b6   :  { %3765 = vmatpush3.msra.mxu0 %v586_v36  ;;  %v835_v47 = vpop.permute.xlu0 %834 }
 0x6b7   :  { %3769 = vmatprep.subr.mxu0 %v174_v38 }
 0x6b8   :  { %v4022_v40 = vpop.eup %4021 }
 0x6b9   :  { %v584_v44 = vmul.f32 %v4022_v40, %v4018_v27 }
 0x6ba   :  { %v1128_v51 = vpop.permute.xlu0 %1127 }
 0x6bc   :  { %v4024_v41 = vpop.eup %4023 }
 0x6bd   :  { %v583_v42 = vmul.f32 %v4024_v41, %v4020_v29  ;;  %v175_v29 = vld [vmem:[%s4830_s6 + $0x10] sm:$0xff] }
 0x6be   :  { %v1122_v53 = vpop.permute.xlu0 %1121 }
 0x6bf   :  { %3766 = vmatprep.mubr.msk.f32.mxu0 %vm358_vm2, %v583_v42 }
 0x6c0   :  { %3767 = vmatmul.mubr.msk.f32.vlgmr.msra.gmra.mxu0 %vm358_vm2, %v584_v44 }
 0x6c1   :  { %3770 = vmatpush3.msra.mxu0 %v174_v38 }
 0x6c2   :  { %3779 = vmatprep.subr.msk.mxu0 %vm270_vm1, %v841_v45 }
 0x780   :  { %v3768_v48 = vpop.f32.mrf.mxu0 }
 0x782   :  { %v663_v50 = vpop.f32.mrf.mxu0 }
 0x783   :  { %3771 = vmatprep.mubr.msk.f32.mxu0 %vm270_vm1, %v663_v50 }
 0x784   :  { %3772 = vmatmul.mubr.msk.f32.vlgmr.msra.gmra.mxu0 %vm270_vm1, %v3768_v48 }
 0x785   :  { %3780 = vmatpush3.xpose.msk.msra.mxu0 %vm270_vm1, %v841_v45  ;;  %3783 = vmatprep.mubr.msk.f32.mxu0 %vm270_vm1, %v835_v47  ;;  %v3778_v45 = vpop.f32.mrf.mxu1 }
 0x786   :  { %3781 = vmatprep.subr.msk.mxu0 %vm270_vm1, %v839_v49 }
 0x787   :  { %v825_v47 = vpop.f32.mrf.mxu1 }
 0x789   :  { %3782 = vmatpush3.xpose.msk.msra.mxu0 %vm270_vm1, %v839_v49 }
 0x78a   :  { %3798 = vmatprep.subr.msk.mxu0 %vm270_vm1, %v1128_v51 }
 0x78c   :  { %3784 = vmatmul.mubr.msk.f32.vlgmr.msra.gmra.mxu0 %vm270_vm1, %v837_v52 }
 0x78d   :  { %3799 = vmatpush3.xpose.msk.msra.mxu0 %vm270_vm1, %v1128_v51  ;;  %3802 = vmatprep.mubr.msk.f32.mxu0 %vm270_vm1, %v1122_v53 }
 0x78e   :  { %3800 = vmatprep.subr.msk.mxu0 %vm270_vm1, %v1126_v54 }
 0x791   :  { %3801 = vmatpush3.xpose.msk.msra.mxu0 %vm270_vm1, %v1126_v54 }
 0x794   :  { %3803 = vmatmul.mubr.msk.f32.vlgmr.msra.gmra.mxu0 %vm270_vm1, %v1124_v55  ;;  %v176_v55 = vld [vmem:[%s4830_s6 + $0x18] sm:$0xff] }
 0x844   :  { %v4453_v56 = vpop.f32.mrf.mxu0 }
 0x846   :  { %v4455_v57 = vpop.f32.mrf.mxu0 }
 0x84c   :  { %v3785_v58 = vpop.f32.mrf.mxu0 }
 0x84d   :  { %v926_v59 = vmul.f32 0.35355338, %v3785_v58  ;;  %v831_v58 = vadd.f32 %v3778_v45, %v4453_v56  ;;  %v1578_v45 = vld [vmem:[%s4836_s12 + $0x28] sm:$0xff] }
 0x84e   :  { %v916_v60 = vpop.f32.mrf.mxu0 }
 0x84f   :  { %v925_v61 = vmul.f32 0.35355338, %v916_v60  ;;  %v928_v62 = vadd.f32 %v926_v59, %v4373_v43  ;;  %v826_v60 = vadd.f32 %v825_v47, %v4455_v57  ;;  %v1577_v47 = vld [vmem:[%s4836_s12 + $0x20] sm:$0xff] }
 0x851   :  { %v932_v63 = vsel %vm358_vm2, %v928_v62, -inf  ;;  %v927_v0 = vadd.f32 %v925_v61, %v4375_v46 }
 0x852   :  { %933 = vmax.xlane.f32.xlu1 %v932_v63 }
 0x853   :  { %v929_v1 = vsel %vm358_vm2, %v927_v0, -inf }
 0x854   :  { %930 = vmax.xlane.f32.xlu0 %v929_v1  ;;  %v3804_v2 = vpop.f32.mrf.mxu0 }
 0x855   :  { %v1213_v21 = vmul.f32 0.35355338, %v3804_v2 }
 0x856   :  { %v1203_v3 = vpop.f32.mrf.mxu0 }
 0x857   :  { %v1212_v4 = vmul.f32 0.35355338, %v1203_v3  ;;  %v1215_v22 = vadd.f32 %v1213_v21, %v4373_v43  ;;  %v3499_v3 = vld [vmem:[%s4831_s7] ss:$0 sm:$0xff]  ;;  %v1464_v21 = vld [vmem:[%s4834_s10 + $0x8] sm:$0xff] }
 0x859   :  { %v1214_v5 = vadd.f32 %v1212_v4, %v4375_v46  ;;  %v1219_v23 = vsel %vm358_vm2, %v1215_v22, -inf }
 0x85b   :  { %v1216_v6 = vsel %vm358_vm2, %v1214_v5, -inf }
 0x863   :  { %951 = vrot.lane.b32.xlu1 %v4359_v39, %s4848_s28 }
 0x887   :  { %1217 = vmax.xlane.f32.xlu1 %v1216_v6 }
 0x8db   :  { %v934_v7 = vpop.xlane.xlu1 %933 }
 0x8dc   :  { %v936_v8 = vsub.f32 %v928_v62, %v934_v7 }
 0x8dd   :  { %v931_v9 = vpop.xlane.xlu0 %930 }
 0x8de   :  { %v939_v10 = vmul.f32 1.442695, %v936_v8  ;;  %v935_v11 = vsub.f32 %v927_v0, %v931_v9 }
 0x8df   :  { %v952_v17 = vpop.permute.xlu1 %951 }
 0x8e0   :  { %4025 = vpow2.f32 %v939_v10  ;;  %v937_v12 = vmul.f32 1.442695, %v935_v11 }
 0x8e2   :  { %4027 = vpow2.f32 %v937_v12 }
 0x8ed   :  { %v4026_v13 = vpop.eup %4025 }
 0x8ee   :  { %v944_v14 = vsel %vm358_vm2, %v4026_v13, 0.0 }
 0x8ef   :  { %v4028_v15 = vpop.eup %4027  ;;  %945 = vadd.xlane.f32.xlu0 %v944_v14 }
 0x8f0   :  { %v941_v16 = vsel %vm358_vm2, %v4028_v15, 0.0 }
 0x8f3   :  { %942 = vadd.xlane.f32.xlu0 %v941_v16 }
 0x909   :  { %953 = vrot.lane.b32.xlu0 %v4357_v37, %s4848_s28 }
 0x910   :  { %v1218_v18 = vpop.xlane.xlu1 %1217 }
 0x911   :  { %v1222_v19 = vsub.f32 %v1214_v5, %v1218_v18 }
 0x913   :  { %v1224_v20 = vmul.f32 1.442695, %v1222_v19 }
 0x915   :  { %4029 = vpow2.f32 %v1224_v20  ;;  %v1465_v20 = vld [vmem:[%s4834_s10 + $0x10] sm:$0xff] }
 0x922   :  { %v4030_v24 = vpop.eup %4029 }
 0x923   :  { %v1228_v25 = vsel %vm358_vm2, %v4030_v24, 0.0 }
 0x928   :  { %1220 = vmax.xlane.f32.xlu0 %v1219_v23 }
 0x92c   :  { %1229 = vadd.xlane.f32.xlu0 %v1228_v25 }
 0x942   :  { %1240 = vrot.lane.b32.xlu0 %v4357_v37, %s4846_s4 }
 0x978   :  { %v946_v26 = vpop.xlane.xlu0 %945 }
 0x979   :  { %4031 = vrcp.f32 %v946_v26 }
 0x97c   :  { %v943_v27 = vpop.xlane.xlu0 %942 }
 0x97d   :  { %4033 = vrcp.f32 %v943_v27 }
 0x980   :  { %v954_v28 = vpop.permute.xlu0 %953 }
 0x981   :  { %3786 = vmatprep.subr.mxu1 %v954_v28 }
 0x982   :  { %3787 = vmatpush3.msra.mxu1 %v954_v28 }
 0x983   :  { %3788 = vmatprep.subr.mxu1 %v952_v17 }
 0x984   :  { %3789 = vmatpush3.msra.mxu1 %v952_v17 }
 0x985   :  { %3793 = vmatprep.subr.mxu1 %v175_v29 }
 0x986   :  { %v4032_v30 = vpop.eup %4031 }
 0x987   :  { %v950_v35 = vmul.f32 %v4032_v30, %v4026_v13  ;;  %v3500_v30 = vld [vmem:[%s4832_s8] ss:$0 sm:$0xff] }
 0x98a   :  { %v4034_v31 = vpop.eup %4033 }
 0x98b   :  { %v949_v33 = vmul.f32 %v4034_v31, %v4028_v15 }
 0x98d   :  { %3790 = vmatprep.mubr.msk.f32.mxu1 %vm358_vm2, %v949_v33 }
 0x98e   :  { %3791 = vmatmul.mubr.msk.f32.vlgmr.msra.gmra.mxu1 %vm358_vm2, %v950_v35 }
 0x98f   :  { %3794 = vmatpush3.msra.mxu1 %v175_v29 }
 0x9b1   :  { %v1221_v37 = vpop.xlane.xlu0 %1220 }
 0x9b2   :  { %v1223_v36 = vsub.f32 %v1215_v22, %v1221_v37  ;;  %v1463_v22 = vld [vmem:[%s4834_s10] sm:$0xff] }
 0x9b4   :  { %v1226_v38 = vmul.f32 1.442695, %v1223_v36  ;;  %v3501_v36 = vld [vmem:[%s4833_s9] ss:$0 sm:$0xff] }
 0x9b5   :  { %v1230_v40 = vpop.xlane.xlu0 %1229 }
 0x9b6   :  { %4035 = vpow2.f32 %v1226_v38 }
 0x9b7   :  { %4037 = vrcp.f32 %v1230_v40 }
 0x9b9   :  { %v1241_v41 = vpop.permute.xlu0 %1240 }
 0x9ba   :  { %3805 = vmatprep.subr.mxu1 %v1241_v41 }
 0x9c3   :  { %v4036_v42 = vpop.eup %4035 }
 0x9c4   :  { %v1231_v44 = vsel %vm358_vm2, %v4036_v42, 0.0  ;;  %v4038_v48 = vpop.eup %4037 }
 0x9c5   :  { %1232 = vadd.xlane.f32.xlu1 %v1231_v44  ;;  %v1236_v52 = vmul.f32 %v4038_v48, %v4030_v24  ;;  %v1579_v44 = vld [vmem:[%s4836_s12 + $0x30] sm:$0xff]  ;;  %v1576_v48 = vld [vmem:[%s4836_s12 + $0x18] sm:$0xff] }
 0x9d6   :  { %1238 = vrot.lane.b32.xlu1 %v4359_v39, %s4846_s4 }
 0xa4e   :  { %v3792_v49 = vpop.f32.mrf.mxu1  ;;  %v1233_v50 = vpop.xlane.xlu1 %1232 }
 0xa4f   :  { %4039 = vrcp.f32 %v1233_v50  ;;  %v1574_v50 = vld [vmem:[%s4836_s12 + $0x8] sm:$0xff] }
 0xa50   :  { %v1029_v51 = vpop.f32.mrf.mxu1 }
 0xa51   :  { %3795 = vmatprep.mubr.msk.f32.mxu1 %vm270_vm1, %v1029_v51  ;;  %v1573_v51 = vld [vmem:[%s4836_s12] sm:$0xff] }
 0xa52   :  { %3796 = vmatmul.mubr.msk.f32.vlgmr.msra.gmra.mxu1 %vm270_vm1, %v3792_v49  ;;  %v1239_v53 = vpop.permute.xlu1 %1238  ;;  %v1575_v49 = vld [vmem:[%s4836_s12 + $0x10] sm:$0xff] }
 0xa53   :  { %3806 = vmatpush3.msra.mxu1 %v1241_v41  ;;  %3809 = vmatprep.mubr.msk.f32.mxu1 %vm358_vm2, %v1236_v52  ;;  %v3502_v52 = vld [vmem:[%s4835_s11] ss:$0 sm:$0xff] }
 0xa54   :  { %3807 = vmatprep.subr.mxu1 %v1239_v53 }
 0xa55   :  { %3808 = vmatpush3.msra.mxu1 %v1239_v53 }
 0xa56   :  { %3812 = vmatprep.subr.mxu1 %v176_v55 }
 0xa5c   :  { %v4040_v39 = vpop.eup %4039 }
 0xa5d   :  { %v1237_v54 = vmul.f32 %v4040_v39, %v4036_v42  ;;  %v1580_v42 = vld [vmem:[%s4836_s12 + $0x38] sm:$0xff] }
 0xa5f   :  { %3810 = vmatmul.mubr.msk.f32.vlgmr.msra.gmra.mxu1 %vm358_vm2, %v1237_v54 }
 0xa60   :  { %3813 = vmatpush3.msra.mxu1 %v176_v55 }
 0xa61   :  { %3828 = vmatprep.subr.mxu1 %v1580_v42 }
 0xb12   :  { %v3797_v59 = vpop.f32.mrf.mxu1 }
 0xb13   :  { %v1120_v61 = vadd.f32 %v3797_v59, %v831_v58 }
 0xb14   :  { %v1110_v62 = vpop.f32.mrf.mxu1 }
 0xb15   :  { %v1119_v63 = vadd.f32 %v1110_v62, %v826_v60 }
 0xb1f   :  { %v3811_v0 = vpop.f32.mrf.mxu1 }
 0xb21   :  { %v1316_v1 = vpop.f32.mrf.mxu1 }
 0xb22   :  { %3814 = vmatprep.mubr.msk.f32.mxu1 %vm270_vm1, %v1316_v1 }
 0xb23   :  { %3815 = vmatmul.mubr.msk.f32.vlgmr.msra.gmra.mxu1 %vm270_vm1, %v3811_v0 }
 0xb24   :  { %3829 = vmatpush3.msra.mxu1 %v1580_v42 }
 0xb25   :  { %3830 = vmatprep.subr.mxu1 %v1579_v44 }
 0xb26   :  { %3831 = vmatpush3.msra.mxu1 %v1579_v44 }
 0xb27   :  { %3832 = vmatprep.subr.mxu1 %v1578_v45 }
 0xb28   :  { %3833 = vmatpush3.msra.mxu1 %v1578_v45 }
 0xb29   :  { %3834 = vmatprep.subr.mxu1 %v1577_v47 }
 0xb2a   :  { %3835 = vmatpush3.msra.mxu1 %v1577_v47 }
 0xb2b   :  { %3836 = vmatprep.subr.mxu1 %v1576_v48 }
 0xb2c   :  { %3837 = vmatpush3.msra.mxu1 %v1576_v48  ;;  %v3509_v48 = vld [vmem:[%s4839_s15] ss:$0 sm:$0xff] }
 0xb2d   :  { %3838 = vmatprep.subr.mxu1 %v1575_v49 }
 0xb2e   :  { %3839 = vmatpush3.msra.mxu1 %v1575_v49 }
 0xb2f   :  { %3840 = vmatprep.subr.mxu1 %v1574_v50 }
 0xb30   :  { %3841 = vmatpush3.msra.mxu1 %v1574_v50 }
 0xb31   :  { %3842 = vmatprep.subr.mxu1 %v1573_v51 }
 0xb32   :  { %3843 = vmatpush3.msra.mxu1 %v1573_v51 }
 0xbe3   :  { %v3816_v2 = vpop.f32.mrf.mxu1 }
 0xbe4   :  { %v1407_v4 = vadd.f32 %v3816_v2, %v1120_v61 }
 0xbe5   :  { %v1397_v5 = vpop.f32.mrf.mxu1 }
 0xbe6   :  { %v1416_v56 = vadd.f32 %v3499_v3, %v1407_v4  ;;  %v1406_v6 = vadd.f32 %v1397_v5, %v1119_v63 }
 0xbe8   :  { %v1415_v7 = vadd.f32 %v3499_v3, %v1406_v6  ;;  %v1418_v57 = vadd.f32 %v1416_v56, %v4350_v34 }
 0xbea   :  { %v1424_v8 = vsel %vm122_vm0, %v1418_v57, 0.0  ;;  %v1417_v9 = vadd.f32 %v1415_v7, %v4346_v32  ;;  %v1466_v32 = vld [vmem:[%s4834_s10 + $0x18] sm:$0xff] }
 0xbeb   :  { %1425 = vadd.xlane.f32.xlu0 %v1424_v8  ;;  %3817 = vmatprep.subr.mxu0 %v1466_v32 }
 0xbec   :  { %v1421_v10 = vsel %vm122_vm0, %v1417_v9, 0.0  ;;  %3818 = vmatpush3.msra.mxu0 %v1466_v32 }
 0xbed   :  { %1422 = vadd.xlane.f32.xlu1 %v1421_v10  ;;  %3819 = vmatprep.subr.mxu0 %v1465_v20  ;;  %v3505_v10 = vld [vmem:[%s4837_s13] ss:$0 sm:$0xff] }
 0xbee   :  { %3820 = vmatpush3.msra.mxu0 %v1465_v20 }
 0xbef   :  { %3821 = vmatprep.subr.mxu0 %v1464_v21 }
 0xbf0   :  { %3822 = vmatpush3.msra.mxu0 %v1464_v21 }
 0xbf1   :  { %3823 = vmatprep.subr.mxu0 %v1463_v22 }
 0xbf2   :  { %3824 = vmatpush3.msra.mxu0 %v1463_v22 }
 0xc74   :  { %v1426_v11 = vpop.xlane.xlu0 %1425 }
 0xc75   :  { %v1428_v12 = vmul.f32 0.03125, %v1426_v11 }
 0xc76   :  { %v1423_v13 = vpop.xlane.xlu1 %1422 }
 0xc77   :  { %v1430_v14 = vsub.f32 %v1418_v57, %v1428_v12  ;;  %v1427_v15 = vmul.f32 0.03125, %v1423_v13 }
 0xc79   :  { %v1429_v16 = vsub.f32 %v1417_v9, %v1427_v15  ;;  %v1432_v17 = vmul.f32 %v1430_v14, %v1430_v14 }
 0xc7b   :  { %v1436_v18 = vsel %vm122_vm0, %v1432_v17, 0.0  ;;  %v1431_v19 = vmul.f32 %v1429_v16, %v1429_v16 }
 0xc7c   :  { %1437 = vadd.xlane.f32.xlu1 %v1436_v18 }
 0xc7d   :  { %v1433_v34 = vsel %vm122_vm0, %v1431_v19, 0.0 }
 0xc7e   :  { %1434 = vadd.xlane.f32.xlu0 %v1433_v34 }
 0xd05   :  { %v1438_v23 = vpop.xlane.xlu1 %1437 }
 0xd06   :  { %v1440_v24 = vmul.f32 0.03125, %v1438_v23 }
 0xd07   :  { %v1435_v25 = vpop.xlane.xlu0 %1434 }
 0xd08   :  { %v1442_v26 = vadd.f32 1e-12, %v1440_v24  ;;  %v1439_v27 = vmul.f32 0.03125, %v1435_v25 }
 0xd0a   :  { %4041 = vrsqrt.f32 %v1442_v26  ;;  %v1441_v28 = vadd.f32 1e-12, %v1439_v27  ;;  %v3513_v27 = vld [vmem:[%s4863_s1 + $0x38] sm:$0xff] }
 0xd0b   :  { %3847 = vmatprep.subr.mxu0 %v3513_v27 }
 0xd0c   :  { %4043 = vrsqrt.f32 %v1441_v28  ;;  %v3512_v28 = vld [vmem:[%s4863_s1 + $0x30] sm:$0xff] }
 0xd17   :  { %v4042_v29 = vpop.eup %4041 }
 0xd18   :  { %v1446_v31 = vmul.f32 %v4042_v29, %v1430_v14  ;;  %v3511_v29 = vld [vmem:[%s4863_s1 + $0x28] sm:$0xff] }
 0xd19   :  { %v4044_v33 = vpop.eup %4043 }
 0xd1a   :  { %v1445_v35 = vmul.f32 %v4044_v33, %v1429_v16  ;;  %v1454_v37 = vmul.f32 %v3500_v30, %v1446_v31 }
 0xd1c   :  { %v1453_v38 = vmul.f32 %v3500_v30, %v1445_v35  ;;  %v1462_v41 = vadd.f32 %v3501_v36, %v1454_v37  ;;  %v3510_v30 = vld [vmem:[%s4863_s1 + $0x20] sm:$0xff] }
 0xd1e   :  { %v4520_v40 = vadd.f32 %v3501_v36, %v1453_v38 }
 0xd20   :  { %3825 = vmatprep.mubr.msk.f32.mxu0 %vm122_vm0, %v4520_v40 }
 0xd21   :  { %3826 = vmatmul.mubr.msk.f32.vlgmr.msra.gmra.mxu0 %vm122_vm0, %v1462_v41 }
 0xd22   :  { %3848 = vmatpush3.msra.mxu0 %v3513_v27 }
 0xd23   :  { %3849 = vmatprep.subr.mxu0 %v3512_v28 }
 0xd24   :  { %3850 = vmatpush3.msra.mxu0 %v3512_v28 }
 0xd25   :  { %3851 = vmatprep.subr.mxu0 %v3511_v29 }
 0xd26   :  { %3852 = vmatpush3.msra.mxu0 %v3511_v29 }
 0xd27   :  { %3853 = vmatprep.subr.mxu0 %v3510_v30 }
 0xd28   :  { %3854 = vmatpush3.msra.mxu0 %v3510_v30 }
 0xde1   :  { %v3827_v53 = vpop.f32.mrf.mxu0 }
 0xde2   :  { %v1552_v39 = vadd.f32 %v3827_v53, %v3502_v52 }
 0xde3   :  { %v1546_v54 = vpop.f32.mrf.mxu0 }
 0xde4   :  { %v1558_v55 = vmul.f32 0.044715, %v1552_v39  ;;  %v1547_v58 = vadd.f32 %v3502_v52, %v1546_v54  ;;  %v1556_v57 = vmul.f32 0.5, %v1552_v39  ;;  %v3519_v52 = vld [vmem:[%s4829_s5 + $0x1] ss:$0 sm:$0xff] }
 0xde6   :  { %v1560_v59 = vmul.f32 %v1558_v55, %v1552_v39  ;;  %v1557_v60 = vmul.f32 0.044715, %v1547_v58  ;;  %v1555_v6 = vmul.f32 0.5, %v1547_v58 }
 0xde8   :  { %v1562_v61 = vmul.f32 %v1560_v59, %v1552_v39  ;;  %v1559_v62 = vmul.f32 %v1557_v60, %v1547_v58 }
 0xdea   :  { %v1564_v63 = vadd.f32 %v1562_v61, %v1552_v39  ;;  %v1561_v0 = vmul.f32 %v1559_v62, %v1547_v58 }
 0xdec   :  { %v1566_v1 = vmul.f32 0.7978846, %v1564_v63  ;;  %v1563_v2 = vadd.f32 %v1561_v0, %v1547_v58 }
 0xdee   :  { %4045 = vtanh.f32 %v1566_v1  ;;  %v1565_v3 = vmul.f32 0.7978846, %v1563_v2 }
 0xdf0   :  { %4047 = vtanh.f32 %v1565_v3 }
 0xdfb   :  { %v4046_v4 = vpop.eup %4045 }
 0xdfc   :  { %v1570_v56 = vadd.f32 1.0, %v4046_v4 }
 0xdfd   :  { %v4048_v5 = vpop.eup %4047 }
 0xdfe   :  { %v1569_v7 = vadd.f32 1.0, %v4048_v5  ;;  %v1572_v9 = vmul.f32 %v1570_v56, %v1556_v57 }
 0xe00   :  { %v1571_v8 = vmul.f32 %v1569_v7, %v1555_v6 }
 0xe02   :  { %3844 = vmatprep.mubr.msk.f32.mxu1 %vm1588_vm3, %v1571_v8 }
 0xe03   :  { %3845 = vmatmul.mubr.msk.f32.vlgmr.msra.gmra.mxu1 %vm1588_vm3, %v1572_v9 }
 0xec3   :  { %v3846_v11 = vpop.f32.mrf.mxu1 }
 0xec4   :  { %v1667_v12 = vadd.f32 %v3846_v11, %v3505_v10 }
 0xec5   :  { %v1661_v13 = vpop.f32.mrf.mxu1 }
 0xec6   :  { %v1662_v14 = vadd.f32 %v3505_v10, %v1661_v13  ;;  %v1671_v15 = vadd.f32 %v1667_v12, %v1462_v41  ;;  %v3508_v41 = vld [vmem:[%s4838_s14] ss:$0 sm:$0xff] }
 0xec8   :  { %v1677_v16 = vsel %vm122_vm0, %v1671_v15, 0.0  ;;  %v1670_v17 = vadd.f32 %v1662_v14, %v4520_v40 }
 0xec9   :  { %1678 = vadd.xlane.f32.xlu1 %v1677_v16 }
 0xeca   :  { %v1674_v18 = vsel %vm122_vm0, %v1670_v17, 0.0 }
 0xecb   :  { %1675 = vadd.xlane.f32.xlu0 %v1674_v18 }
 0xf52   :  { %v1679_v19 = vpop.xlane.xlu1 %1678 }
 0xf53   :  { %v1681_v34 = vmul.f32 0.03125, %v1679_v19 }
 0xf54   :  { %v1676_v32 = vpop.xlane.xlu0 %1675 }
 0xf55   :  { %v1683_v20 = vsub.f32 %v1671_v15, %v1681_v34  ;;  %v1680_v21 = vmul.f32 0.03125, %v1676_v32 }
 0xf57   :  { %v1682_v22 = vsub.f32 %v1670_v17, %v1680_v21  ;;  %v1685_v23 = vmul.f32 %v1683_v20, %v1683_v20 }
 0xf59   :  { %v1689_v24 = vsel %vm122_vm0, %v1685_v23, 0.0  ;;  %v1684_v25 = vmul.f32 %v1682_v22, %v1682_v22 }
 0xf5a   :  { %1690 = vadd.xlane.f32.xlu1 %v1689_v24 }
 0xf5b   :  { %v1686_v26 = vsel %vm122_vm0, %v1684_v25, 0.0 }
 0xf5c   :  { %1687 = vadd.xlane.f32.xlu0 %v1686_v26 }
 0xfe3   :  { %v1691_v31 = vpop.xlane.xlu1 %1690 }
 0xfe4   :  { %v1693_v33 = vmul.f32 0.03125, %v1691_v31 }
 0xfe5   :  { %v1688_v35 = vpop.xlane.xlu0 %1687 }
 0xfe6   :  { %v1695_v37 = vadd.f32 1e-12, %v1693_v33  ;;  %v1692_v36 = vmul.f32 0.03125, %v1688_v35 }
 0xfe8   :  { %4049 = vrsqrt.f32 %v1695_v37  ;;  %v1694_v38 = vadd.f32 1e-12, %v1692_v36 }
 0xfea   :  { %4051 = vrsqrt.f32 %v1694_v38 }
 0xff5   :  { %v4050_v40 = vpop.eup %4049 }
 0xff6   :  { %v1699_v42 = vmul.f32 %v4050_v40, %v1683_v20 }
 0xff7   :  { %v4052_v44 = vpop.eup %4051 }
 0xff8   :  { %v1698_v45 = vmul.f32 %v4052_v44, %v1682_v22  ;;  %v1707_v47 = vmul.f32 %v3508_v41, %v1699_v42  ;;  %v3515_v22 = vld [vmem:[%s4830_s6 + $0x20] sm:$0xff] }
 0xffa   :  { %v1706_v49 = vmul.f32 %v3508_v41, %v1698_v45  ;;  %v4582_v51 = vadd.f32 %v3509_v48, %v1707_v47 }
 0xffc   :  { %v4580_v50 = vadd.f32 %v3509_v48, %v1706_v49 }
 0xffe   :  { %3855 = vmatprep.mubr.msk.f32.mxu0 %vm122_vm0, %v4580_v50 }
 0xfff   :  { %3856 = vmatmul.mubr.msk.f32.vlgmr.msra.gmra.mxu0 %vm122_vm0, %v4582_v51 }
0x10bf   :  { %v3857_v53 = vpop.f32.mrf.mxu0 }
0x10c0   :  { %v4591_v39 = vadd.f32 %v3857_v53, %v3519_v52 }
0x10c1   :  { %v1806_v54 = vpop.f32.mrf.mxu0 }
0x10c2   :  { %v4593_v55 = vadd.f32 %v3519_v52, %v1806_v54  ;;  %1819 = vrot.lane.b32.xlu0 %v4591_v39, %s4197_s29  ;;  %v3516_v52 = vld [vmem:[%s4830_s6 + $0x28] sm:$0xff] }
0x10c4   :  { %1817 = vrot.lane.b32.xlu1 %v4593_v55, %s4197_s29  ;;  %3862 = vmatprep.mubr.msk.f32.mxu0 %vm270_vm1, %v4593_v55 }
0x1134   :  { %v1820_v58 = vpop.permute.xlu0 %1819 }
0x1135   :  { %3858 = vmatprep.subr.msk.mxu0 %vm270_vm1, %v1820_v58 }
0x1136   :  { %3859 = vmatpush3.xpose.msk.msra.mxu0 %vm270_vm1, %v1820_v58  ;;  %v1818_v59 = vpop.permute.xlu1 %1817 }
0x1137   :  { %3860 = vmatprep.subr.msk.mxu0 %vm270_vm1, %v1818_v59 }
0x113a   :  { %3861 = vmatpush3.xpose.msk.msra.mxu0 %vm270_vm1, %v1818_v59 }
0x113d   :  { %3863 = vmatmul.mubr.msk.f32.vlgmr.msra.gmra.mxu0 %vm270_vm1, %v4591_v39 }
0x11fd   :  { %v3864_v60 = vpop.f32.mrf.mxu0 }
0x11fe   :  { %v1905_v61 = vmul.f32 0.35355338, %v3864_v60 }
0x11ff   :  { %v1895_v62 = vpop.f32.mrf.mxu0 }
0x1200   :  { %v1904_v63 = vmul.f32 0.35355338, %v1895_v62  ;;  %v1907_v0 = vadd.f32 %v1905_v61, %v4373_v43 }
0x1202   :  { %v1911_v1 = vsel %vm358_vm2, %v1907_v0, -inf  ;;  %v1906_v2 = vadd.f32 %v1904_v63, %v4375_v46 }
0x1203   :  { %1912 = vmax.xlane.f32.xlu0 %v1911_v1 }
0x1204   :  { %v1908_v3 = vsel %vm358_vm2, %v1906_v2, -inf }
0x1205   :  { %1909 = vmax.xlane.f32.xlu1 %v1908_v3 }
0x128c   :  { %v1913_v4 = vpop.xlane.xlu0 %1912 }
0x128d   :  { %v1915_v5 = vsub.f32 %v1907_v0, %v1913_v4 }
0x128e   :  { %v1910_v56 = vpop.xlane.xlu1 %1909 }
0x128f   :  { %v1918_v6 = vmul.f32 1.442695, %v1915_v5  ;;  %v1914_v7 = vsub.f32 %v1906_v2, %v1910_v56 }
0x1291   :  { %4053 = vpow2.f32 %v1918_v6  ;;  %v1916_v57 = vmul.f32 1.442695, %v1914_v7 }
0x1293   :  { %4055 = vpow2.f32 %v1916_v57 }
0x129e   :  { %v4054_v8 = vpop.eup %4053 }
0x129f   :  { %v1923_v9 = vsel %vm358_vm2, %v4054_v8, 0.0 }
0x12a0   :  { %v4056_v10 = vpop.eup %4055  ;;  %1924 = vadd.xlane.f32.xlu1 %v1923_v9 }
0x12a1   :  { %v1920_v11 = vsel %vm358_vm2, %v4056_v10, 0.0 }
0x12a2   :  { %1921 = vadd.xlane.f32.xlu0 %v1920_v11 }
0x12b1   :  { %1930 = vrot.lane.b32.xlu1 %v4593_v55, %s4198_s25 }
0x12b5   :  { %2023 = vrot.lane.b32.xlu1 %v4591_v39, %s4199_s26 }
0x12b8   :  { %1932 = vrot.lane.b32.xlu0 %v4591_v39, %s4198_s25  ;;  %s4864_s25 = smov 72  }
0x12b9   :  { %2021 = vrot.lane.b32.xlu1 %v4593_v55, %s4199_s26  ;;  %s4865_s26 = smov 104  }
0x12bc   :  { %2017 = vrot.lane.b32.xlu0 %v4593_v55, %s4200_s27 }
0x12bd   :  { %2019 = vrot.lane.b32.xlu1 %v4591_v39, %s4200_s27 }
0x1329   :  { %v1925_v12 = vpop.xlane.xlu1 %1924 }
0x132a   :  { %4057 = vrcp.f32 %v1925_v12 }
0x132b   :  { %v1922_v13 = vpop.xlane.xlu0 %1921 }
0x132c   :  { %4059 = vrcp.f32 %v1922_v13  ;;  %v4104_v13 = vld [vmem:[#allocation5] sm:$0xff] }
0x132d   :  { %v1931_v14 = vpop.permute.xlu1 %1930 }
0x132f   :  { %v1933_v15 = vpop.permute.xlu0 %1932 }
0x1330   :  { %3865 = vmatprep.subr.mxu1 %v1933_v15 }
0x1331   :  { %3866 = vmatpush3.msra.mxu1 %v1933_v15  ;;  %v2024_v16 = vpop.permute.xlu1 %2023 }
0x1332   :  { %3867 = vmatprep.subr.mxu1 %v1931_v14 }
0x1333   :  { %3868 = vmatpush3.msra.mxu1 %v1931_v14  ;;  %v2018_v32 = vpop.permute.xlu0 %2017 }
0x1334   :  { %3872 = vmatprep.subr.msk.mxu1 %vm270_vm1, %v2024_v16 }
0x1335   :  { %v2022_v20 = vpop.permute.xlu1 %2021 }
0x1337   :  { %v4058_v17 = vpop.eup %4057 }
0x1338   :  { %v1929_v34 = vmul.f32 %v4058_v17, %v4054_v8 }
0x1339   :  { %v4060_v18 = vpop.eup %4059  ;;  %v2020_v21 = vpop.permute.xlu1 %2019 }
0x133a   :  { %v1928_v19 = vmul.f32 %v4060_v18, %v4056_v10  ;;  %v4103_v10 = vld [vmem:[#allocation5 + $0x8] sm:$0xff] }
0x133c   :  { %3869 = vmatprep.mubr.msk.f32.mxu1 %vm358_vm2, %v1928_v19 }
0x133d   :  { %3870 = vmatmul.mubr.msk.f32.vlgmr.msra.gmra.mxu1 %vm358_vm2, %v1929_v34 }
0x133e   :  { %3873 = vmatpush3.xpose.msk.msra.mxu1 %vm270_vm1, %v2024_v16  ;;  %3876 = vmatprep.mubr.msk.f32.mxu1 %vm270_vm1, %v2018_v32 }
0x133f   :  { %3874 = vmatprep.subr.msk.mxu1 %vm270_vm1, %v2022_v20 }
0x1342   :  { %3875 = vmatpush3.xpose.msk.msra.mxu1 %vm270_vm1, %v2022_v20 }
0x1343   :  { %3891 = vmatprep.subr.mxu1 %v3515_v22 }
0x1345   :  { %3877 = vmatmul.mubr.msk.f32.vlgmr.msra.gmra.mxu1 %vm270_vm1, %v2020_v21 }
0x1346   :  { %3892 = vmatpush3.msra.mxu1 %v3515_v22 }
0x13fd   :  { %v3871_v23 = vpop.f32.mrf.mxu1 }
0x13ff   :  { %v2008_v24 = vpop.f32.mrf.mxu1 }
0x1400   :  { %3893 = vmatprep.mubr.msk.f32.mxu1 %vm270_vm1, %v2008_v24 }
0x1401   :  { %3894 = vmatmul.mubr.msk.f32.vlgmr.msra.gmra.mxu1 %vm270_vm1, %v3871_v23 }
0x1405   :  { %v3878_v25 = vpop.f32.mrf.mxu1 }
0x1406   :  { %v2109_v26 = vmul.f32 0.35355338, %v3878_v25 }
0x1407   :  { %v2099_v27 = vpop.f32.mrf.mxu1 }
0x1408   :  { %v2108_v28 = vmul.f32 0.35355338, %v2099_v27  ;;  %v2111_v29 = vadd.f32 %v2109_v26, %v4373_v43 }
0x140a   :  { %v2115_v30 = vsel %vm358_vm2, %v2111_v29, -inf  ;;  %v2110_v31 = vadd.f32 %v2108_v28, %v4375_v46 }
0x140b   :  { %2116 = vmax.xlane.f32.xlu1 %v2115_v30 }
0x140c   :  { %v2112_v33 = vsel %vm358_vm2, %v2110_v31, -inf }
0x140d   :  { %2113 = vmax.xlane.f32.xlu0 %v2112_v33 }
0x141c   :  { %2134 = vrot.lane.b32.xlu1 %v4593_v55, %s4201_s21 }
0x1420   :  { %2389 = vrot.lane.b32.xlu1 %v4591_v39, %s4202_s22 }
0x1424   :  { %2387 = vrot.lane.b32.xlu1 %v4593_v55, %s4202_s22 }
0x1428   :  { %2385 = vrot.lane.b32.xlu1 %v4591_v39, %s4203_s23 }
0x142c   :  { %2674 = vrot.lane.b32.xlu1 %v4593_v55, %s4864_s25 }
0x1430   :  { %2672 = vrot.lane.b32.xlu1 %v4591_v39, %s4865_s26 }
0x1494   :  { %v2117_v43 = vpop.xlane.xlu1 %2116 }
0x1495   :  { %v2119_v46 = vsub.f32 %v2111_v29, %v2117_v43 }
0x1496   :  { %v2114_v35 = vpop.xlane.xlu0 %2113 }
0x1497   :  { %v2122_v37 = vmul.f32 1.442695, %v2119_v46  ;;  %v2118_v36 = vsub.f32 %v2110_v31, %v2114_v35 }
0x1498   :  { %v2135_v49 = vpop.permute.xlu1 %2134 }
0x1499   :  { %4061 = vpow2.f32 %v2122_v37  ;;  %v2120_v38 = vmul.f32 1.442695, %v2118_v36 }
0x149b   :  { %4063 = vpow2.f32 %v2120_v38 }
0x149c   :  { %v2390_v60 = vpop.permute.xlu1 %2389 }
0x14a0   :  { %v2388_v63 = vpop.permute.xlu1 %2387 }
0x14a4   :  { %v2386_v2 = vpop.permute.xlu1 %2385 }
0x14a6   :  { %v4062_v40 = vpop.eup %4061 }
0x14a7   :  { %v2127_v41 = vsel %vm358_vm2, %v4062_v40, 0.0 }
0x14a8   :  { %v4064_v42 = vpop.eup %4063  ;;  %2128 = vadd.xlane.f32.xlu0 %v2127_v41  ;;  %v2675_v4 = vpop.permute.xlu1 %2674 }
0x14a9   :  { %v2124_v44 = vsel %vm358_vm2, %v4064_v42, 0.0 }
0x14ac   :  { %2125 = vadd.xlane.f32.xlu0 %v2124_v44  ;;  %v2673_v5 = vpop.permute.xlu1 %2672 }
0x14c2   :  { %2136 = vrot.lane.b32.xlu0 %v4591_v39, %s4201_s21  ;;  %s4866_s21 = smov 48  }
0x14c6   :  { %2383 = vrot.lane.b32.xlu0 %v4593_v55, %s4203_s23  ;;  %s4867_s23 = smov 40  }
0x14ca   :  { %2676 = vrot.lane.b32.xlu0 %v4591_v39, %s4864_s25 }
0x14ce   :  { %2670 = vrot.lane.b32.xlu0 %v4593_v55, %s4865_s26 }
0x1531   :  { %v2129_v45 = vpop.xlane.xlu0 %2128 }
0x1532   :  { %4065 = vrcp.f32 %v2129_v45 }
0x1535   :  { %v2126_v47 = vpop.xlane.xlu0 %2125 }
0x1536   :  { %4067 = vrcp.f32 %v2126_v47 }
0x1539   :  { %v2137_v48 = vpop.permute.xlu0 %2136 }
0x153a   :  { %3879 = vmatprep.subr.mxu0 %v2137_v48 }
0x153b   :  { %3880 = vmatpush3.msra.mxu0 %v2137_v48 }
0x153c   :  { %3881 = vmatprep.subr.mxu0 %v2135_v49 }
0x153d   :  { %3882 = vmatpush3.msra.mxu0 %v2135_v49  ;;  %v2384_v61 = vpop.permute.xlu0 %2383 }
0x153e   :  { %3886 = vmatprep.subr.mxu0 %v3516_v52 }
0x153f   :  { %v4066_v53 = vpop.eup %4065 }
0x1540   :  { %v2133_v59 = vmul.f32 %v4066_v53, %v4062_v40 }
0x1541   :  { %v2677_v1 = vpop.permute.xlu0 %2676 }
0x1543   :  { %v4068_v54 = vpop.eup %4067 }
0x1544   :  { %v2132_v58 = vmul.f32 %v4068_v54, %v4064_v42  ;;  %v3517_v42 = vld [vmem:[%s4830_s6 + $0x30] sm:$0xff] }
0x1545   :  { %v2671_v3 = vpop.permute.xlu0 %2670 }
0x1546   :  { %3883 = vmatprep.mubr.msk.f32.mxu0 %vm358_vm2, %v2132_v58 }
0x1547   :  { %3884 = vmatmul.mubr.msk.f32.vlgmr.msra.gmra.mxu0 %vm358_vm2, %v2133_v59 }
0x1548   :  { %3887 = vmatpush3.msra.mxu0 %v3516_v52 }
0x1549   :  { %3896 = vmatprep.subr.msk.mxu0 %vm270_vm1, %v2390_v60 }
0x1607   :  { %v3885_v62 = vpop.f32.mrf.mxu0 }
0x1609   :  { %v2212_v0 = vpop.f32.mrf.mxu0 }
0x160a   :  { %3888 = vmatprep.mubr.msk.f32.mxu0 %vm270_vm1, %v2212_v0 }
0x160b   :  { %3889 = vmatmul.mubr.msk.f32.vlgmr.msra.gmra.mxu0 %vm270_vm1, %v3885_v62 }
0x160c   :  { %3897 = vmatpush3.xpose.msk.msra.mxu0 %vm270_vm1, %v2390_v60  ;;  %3900 = vmatprep.mubr.msk.f32.mxu0 %vm270_vm1, %v2384_v61  ;;  %v3895_v60 = vpop.f32.mrf.mxu1 }
0x160d   :  { %3898 = vmatprep.subr.msk.mxu0 %vm270_vm1, %v2388_v63 }
0x160e   :  { %v2374_v61 = vpop.f32.mrf.mxu1 }
0x1610   :  { %3899 = vmatpush3.xpose.msk.msra.mxu0 %vm270_vm1, %v2388_v63 }
0x1611   :  { %3915 = vmatprep.subr.msk.mxu0 %vm270_vm1, %v2677_v1 }
0x1613   :  { %3901 = vmatmul.mubr.msk.f32.vlgmr.msra.gmra.mxu0 %vm270_vm1, %v2386_v2 }
0x1614   :  { %3916 = vmatpush3.xpose.msk.msra.mxu0 %vm270_vm1, %v2677_v1  ;;  %3919 = vmatprep.mubr.msk.f32.mxu0 %vm270_vm1, %v2671_v3 }
0x1615   :  { %3917 = vmatprep.subr.msk.mxu0 %vm270_vm1, %v2675_v4 }
0x1618   :  { %3918 = vmatpush3.xpose.msk.msra.mxu0 %vm270_vm1, %v2675_v4 }
0x161b   :  { %3920 = vmatmul.mubr.msk.f32.vlgmr.msra.gmra.mxu0 %vm270_vm1, %v2673_v5  ;;  %v3518_v5 = vld [vmem:[%s4830_s6 + $0x38] sm:$0xff] }
0x16cb   :  { %v4683_v56 = vpop.f32.mrf.mxu0 }
0x16cd   :  { %v4685_v6 = vpop.f32.mrf.mxu0 }
0x16d3   :  { %v3902_v7 = vpop.f32.mrf.mxu0 }
0x16d4   :  { %v2475_v57 = vmul.f32 0.35355338, %v3902_v7  ;;  %v2380_v7 = vadd.f32 %v3895_v60, %v4683_v56  ;;  %v3571_v60 = vld [vmem:[%s4836_s12 + $0x58] sm:$0xff] }
0x16d5   :  { %v2465_v8 = vpop.f32.mrf.mxu0 }
0x16d6   :  { %v2474_v9 = vmul.f32 0.35355338, %v2465_v8  ;;  %v2477_v11 = vadd.f32 %v4103_v10, %v2475_v57  ;;  %v2375_v8 = vadd.f32 %v2374_v61, %v4685_v6  ;;  %v3570_v61 = vld [vmem:[%s4836_s12 + $0x50] sm:$0xff] }
0x16d8   :  { %v2481_v12 = vsel %vm358_vm2, %v2477_v11, -inf  ;;  %v2476_v14 = vadd.f32 %v4104_v13, %v2474_v9 }
0x16d9   :  { %2482 = vmax.xlane.f32.xlu1 %v2481_v12 }
0x16da   :  { %v2478_v15 = vsel %vm358_vm2, %v2476_v14, -inf }
0x16db   :  { %2479 = vmax.xlane.f32.xlu0 %v2478_v15  ;;  %v3921_v16 = vpop.f32.mrf.mxu0  ;;  %v3555_v15 = vld [vmem:[%s4831_s7 + $0x1] ss:$0 sm:$0xff] }
0x16dc   :  { %v2762_v43 = vmul.f32 0.35355338, %v3921_v16 }
0x16dd   :  { %v2752_v17 = vpop.f32.mrf.mxu0 }
0x16de   :  { %v2761_v18 = vmul.f32 0.35355338, %v2752_v17  ;;  %v2764_v46 = vadd.f32 %v4103_v10, %v2762_v43 }
0x16e0   :  { %v2763_v19 = vadd.f32 %v4104_v13, %v2761_v18  ;;  %v2768_v35 = vsel %vm358_vm2, %v2764_v46, -inf }
0x16e2   :  { %v2765_v34 = vsel %vm358_vm2, %v2763_v19, -inf }
0x16ea   :  { %2500 = vrot.lane.b32.xlu1 %v4593_v55, %s4866_s21 }
0x170e   :  { %2766 = vmax.xlane.f32.xlu1 %v2765_v34 }
0x1762   :  { %v2483_v32 = vpop.xlane.xlu1 %2482 }
0x1763   :  { %v2485_v20 = vsub.f32 %v2477_v11, %v2483_v32 }
0x1764   :  { %v2480_v21 = vpop.xlane.xlu0 %2479 }
0x1765   :  { %v2488_v22 = vmul.f32 1.442695, %v2485_v20  ;;  %v2484_v23 = vsub.f32 %v2476_v14, %v2480_v21 }
0x1766   :  { %v2501_v29 = vpop.permute.xlu1 %2500 }
0x1767   :  { %4069 = vpow2.f32 %v2488_v22  ;;  %v2486_v24 = vmul.f32 1.442695, %v2484_v23 }
0x1769   :  { %4071 = vpow2.f32 %v2486_v24 }
0x1774   :  { %v4070_v25 = vpop.eup %4069 }
0x1775   :  { %v2493_v26 = vsel %vm358_vm2, %v4070_v25, 0.0 }
0x1776   :  { %v4072_v27 = vpop.eup %4071  ;;  %2494 = vadd.xlane.f32.xlu0 %v2493_v26 }
0x1777   :  { %v2490_v28 = vsel %vm358_vm2, %v4072_v27, 0.0 }
0x177a   :  { %2491 = vadd.xlane.f32.xlu0 %v2490_v28 }
0x1790   :  { %2502 = vrot.lane.b32.xlu0 %v4591_v39, %s4866_s21 }
0x1797   :  { %v2767_v30 = vpop.xlane.xlu1 %2766 }
0x1798   :  { %v2771_v31 = vsub.f32 %v2763_v19, %v2767_v30  ;;  %v3562_v30 = vld [vmem:[%s4834_s10 + $0x30] sm:$0xff] }
0x179a   :  { %v2773_v33 = vmul.f32 1.442695, %v2771_v31  ;;  %v3561_v31 = vld [vmem:[%s4834_s10 + $0x28] sm:$0xff] }
0x179c   :  { %4073 = vpow2.f32 %v2773_v33  ;;  %v3560_v33 = vld [vmem:[%s4834_s10 + $0x20] sm:$0xff] }
0x17a9   :  { %v4074_v37 = vpop.eup %4073 }
0x17aa   :  { %v2777_v36 = vsel %vm358_vm2, %v4074_v37, 0.0 }
0x17af   :  { %2769 = vmax.xlane.f32.xlu0 %v2768_v35 }
0x17b3   :  { %2778 = vadd.xlane.f32.xlu0 %v2777_v36 }
0x17c9   :  { %2789 = vrot.lane.b32.xlu0 %v4591_v39, %s4867_s23 }
0x17ff   :  { %v2495_v38 = vpop.xlane.xlu0 %2494 }
0x1800   :  { %4075 = vrcp.f32 %v2495_v38 }
0x1803   :  { %v2492_v40 = vpop.xlane.xlu0 %2491 }
0x1804   :  { %4077 = vrcp.f32 %v2492_v40 }
0x1807   :  { %v2503_v41 = vpop.permute.xlu0 %2502 }
0x1808   :  { %3903 = vmatprep.subr.mxu1 %v2503_v41 }
0x1809   :  { %3904 = vmatpush3.msra.mxu1 %v2503_v41  ;;  %v3558_v41 = vld [vmem:[%s4832_s8 + $0x1] ss:$0 sm:$0xff] }
0x180a   :  { %3905 = vmatprep.subr.mxu1 %v2501_v29 }
0x180b   :  { %3906 = vmatpush3.msra.mxu1 %v2501_v29 }
0x180c   :  { %3910 = vmatprep.subr.mxu1 %v3517_v42 }
0x180d   :  { %v4076_v44 = vpop.eup %4075 }
0x180e   :  { %v2499_v48 = vmul.f32 %v4076_v44, %v4070_v25 }
0x1811   :  { %v4078_v45 = vpop.eup %4077 }
0x1812   :  { %v2498_v47 = vmul.f32 %v4078_v45, %v4072_v27 }
0x1814   :  { %3907 = vmatprep.mubr.msk.f32.mxu1 %vm358_vm2, %v2498_v47 }
0x1815   :  { %3908 = vmatmul.mubr.msk.f32.vlgmr.msra.gmra.mxu1 %vm358_vm2, %v2499_v48  ;;  %v3559_v48 = vld [vmem:[%s4833_s9 + $0x1] ss:$0 sm:$0xff] }
0x1816   :  { %3911 = vmatpush3.msra.mxu1 %v3517_v42 }
0x1838   :  { %v2770_v39 = vpop.xlane.xlu0 %2769 }
0x1839   :  { %v2772_v49 = vsub.f32 %v2764_v46, %v2770_v39 }
0x183b   :  { %v2775_v52 = vmul.f32 1.442695, %v2772_v49 }
0x183c   :  { %v2779_v53 = vpop.xlane.xlu0 %2778 }
0x183d   :  { %4079 = vpow2.f32 %v2775_v52 }
0x183e   :  { %4081 = vrcp.f32 %v2779_v53  ;;  %v3575_v53 = vld [vmem:[%s4836_s12 + $0x78] sm:$0xff] }
0x1840   :  { %v2790_v54 = vpop.permute.xlu0 %2789 }
0x1841   :  { %3922 = vmatprep.subr.mxu1 %v2790_v54 }
0x184a   :  { %v4080_v58 = vpop.eup %4079 }
0x184b   :  { %v2780_v59 = vsel %vm358_vm2, %v4080_v58, 0.0  ;;  %v4082_v62 = vpop.eup %4081 }
0x184c   :  { %2781 = vadd.xlane.f32.xlu1 %v2780_v59  ;;  %v2785_v2 = vmul.f32 %v4082_v62, %v4074_v37  ;;  %v3572_v59 = vld [vmem:[%s4836_s12 + $0x60] sm:$0xff]  ;;  %v3569_v62 = vld [vmem:[%s4836_s12 + $0x48] sm:$0xff] }
0x185d   :  { %2787 = vrot.lane.b32.xlu1 %v4593_v55, %s4867_s23 }
0x18d5   :  { %v3909_v63 = vpop.f32.mrf.mxu1  ;;  %v2782_v0 = vpop.xlane.xlu1 %2781 }
0x18d6   :  { %4083 = vrcp.f32 %v2782_v0  ;;  %v3565_v0 = vld [vmem:[%s4835_s11 + $0x1] ss:$0 sm:$0xff] }
0x18d7   :  { %v2578_v1 = vpop.f32.mrf.mxu1 }
0x18d8   :  { %3912 = vmatprep.mubr.msk.f32.mxu1 %vm270_vm1, %v2578_v1 }
0x18d9   :  { %3913 = vmatmul.mubr.msk.f32.vlgmr.msra.gmra.mxu1 %vm270_vm1, %v3909_v63  ;;  %v2788_v3 = vpop.permute.xlu1 %2787  ;;  %v3568_v63 = vld [vmem:[%s4836_s12 + $0x40] sm:$0xff] }
0x18da   :  { %3923 = vmatpush3.msra.mxu1 %v2790_v54  ;;  %3926 = vmatprep.mubr.msk.f32.mxu1 %vm358_vm2, %v2785_v2  ;;  %v3574_v54 = vld [vmem:[%s4836_s12 + $0x70] sm:$0xff] }
0x18db   :  { %3924 = vmatprep.subr.mxu1 %v2788_v3 }
0x18dc   :  { %3925 = vmatpush3.msra.mxu1 %v2788_v3 }
0x18dd   :  { %3929 = vmatprep.subr.mxu1 %v3518_v5 }
0x18e3   :  { %v4084_v55 = vpop.eup %4083 }
0x18e4   :  { %v2786_v4 = vmul.f32 %v4084_v55, %v4080_v58  ;;  %v3573_v58 = vld [vmem:[%s4836_s12 + $0x68] sm:$0xff] }
0x18e6   :  { %3927 = vmatmul.mubr.msk.f32.vlgmr.msra.gmra.mxu1 %vm358_vm2, %v2786_v4 }
0x18e7   :  { %3930 = vmatpush3.msra.mxu1 %v3518_v5 }
0x18e8   :  { %3945 = vmatprep.subr.mxu1 %v3575_v53 }
0x1999   :  { %v3914_v57 = vpop.f32.mrf.mxu1 }
0x199a   :  { %v2669_v9 = vadd.f32 %v3914_v57, %v2380_v7 }
0x199b   :  { %v2659_v10 = vpop.f32.mrf.mxu1 }
0x199c   :  { %v2668_v11 = vadd.f32 %v2659_v10, %v2375_v8 }
0x19a6   :  { %v3928_v12 = vpop.f32.mrf.mxu1 }
0x19a8   :  { %v2865_v13 = vpop.f32.mrf.mxu1 }
0x19a9   :  { %3931 = vmatprep.mubr.msk.f32.mxu1 %vm270_vm1, %v2865_v13 }
0x19aa   :  { %3932 = vmatmul.mubr.msk.f32.vlgmr.msra.gmra.mxu1 %vm270_vm1, %v3928_v12 }
0x19ab   :  { %3946 = vmatpush3.msra.mxu1 %v3575_v53 }
0x19ac   :  { %3947 = vmatprep.subr.mxu1 %v3574_v54 }
0x19ad   :  { %3948 = vmatpush3.msra.mxu1 %v3574_v54  ;;  %v3583_v54 = vld [vmem:[%s4839_s15 + $0x1] ss:$0 sm:$0xff] }
0x19ae   :  { %3949 = vmatprep.subr.mxu1 %v3573_v58 }
0x19af   :  { %3950 = vmatpush3.msra.mxu1 %v3573_v58 }
0x19b0   :  { %3951 = vmatprep.subr.mxu1 %v3572_v59 }
0x19b1   :  { %3952 = vmatpush3.msra.mxu1 %v3572_v59 }
0x19b2   :  { %3953 = vmatprep.subr.mxu1 %v3571_v60 }
0x19b3   :  { %3954 = vmatpush3.msra.mxu1 %v3571_v60 }
0x19b4   :  { %3955 = vmatprep.subr.mxu1 %v3570_v61 }
0x19b5   :  { %3956 = vmatpush3.msra.mxu1 %v3570_v61 }
0x19b6   :  { %3957 = vmatprep.subr.mxu1 %v3569_v62 }
0x19b7   :  { %3958 = vmatpush3.msra.mxu1 %v3569_v62 }
0x19b8   :  { %3959 = vmatprep.subr.mxu1 %v3568_v63 }
0x19b9   :  { %3960 = vmatpush3.msra.mxu1 %v3568_v63 }
0x1a6a   :  { %v3933_v14 = vpop.f32.mrf.mxu1 }
0x1a6b   :  { %v2956_v16 = vadd.f32 %v3933_v14, %v2669_v9 }
0x1a6c   :  { %v2946_v17 = vpop.f32.mrf.mxu1 }
0x1a6d   :  { %v2966_v56 = vadd.f32 %v3555_v15, %v2956_v16  ;;  %v2955_v18 = vadd.f32 %v2946_v17, %v2668_v11 }
0x1a6f   :  { %v2965_v19 = vadd.f32 %v3555_v15, %v2955_v18  ;;  %v2968_v6 = vadd.f32 %v2966_v56, %v4582_v51 }
0x1a71   :  { %v2976_v34 = vsel %vm122_vm0, %v2968_v6, 0.0  ;;  %v2967_v32 = vadd.f32 %v2965_v19, %v4580_v50  ;;  %v3563_v50 = vld [vmem:[%s4834_s10 + $0x38] sm:$0xff] }
0x1a72   :  { %2977 = vadd.xlane.f32.xlu0 %v2976_v34  ;;  %3934 = vmatprep.subr.mxu0 %v3563_v50  ;;  %v3577_v34 = vld [vmem:[%s4837_s13 + $0x1] ss:$0 sm:$0xff] }
0x1a73   :  { %v2973_v20 = vsel %vm122_vm0, %v2967_v32, 0.0  ;;  %3935 = vmatpush3.msra.mxu0 %v3563_v50 }
0x1a74   :  { %2974 = vadd.xlane.f32.xlu1 %v2973_v20  ;;  %3936 = vmatprep.subr.mxu0 %v3562_v30 }
0x1a75   :  { %3937 = vmatpush3.msra.mxu0 %v3562_v30 }
0x1a76   :  { %3938 = vmatprep.subr.mxu0 %v3561_v31 }
0x1a77   :  { %3939 = vmatpush3.msra.mxu0 %v3561_v31 }
0x1a78   :  { %3940 = vmatprep.subr.mxu0 %v3560_v33 }
0x1a79   :  { %3941 = vmatpush3.msra.mxu0 %v3560_v33 }
0x1afb   :  { %v2978_v21 = vpop.xlane.xlu0 %2977 }
0x1afc   :  { %v2980_v22 = vmul.f32 0.03125, %v2978_v21 }
0x1afd   :  { %v2975_v23 = vpop.xlane.xlu1 %2974 }
0x1afe   :  { %v2982_v24 = vsub.f32 %v2968_v6, %v2980_v22  ;;  %v2979_v25 = vmul.f32 0.03125, %v2975_v23 }
0x1b00   :  { %v2981_v26 = vsub.f32 %v2967_v32, %v2979_v25  ;;  %v2984_v27 = vmul.f32 %v2982_v24, %v2982_v24 }
0x1b02   :  { %v2988_v28 = vsel %vm122_vm0, %v2984_v27, 0.0  ;;  %v2983_v29 = vmul.f32 %v2981_v26, %v2981_v26 }
0x1b03   :  { %2989 = vadd.xlane.f32.xlu1 %v2988_v28 }
0x1b04   :  { %v2985_v51 = vsel %vm122_vm0, %v2983_v29, 0.0 }
0x1b05   :  { %2986 = vadd.xlane.f32.xlu0 %v2985_v51 }
0x1b8c   :  { %v2990_v43 = vpop.xlane.xlu1 %2989 }
0x1b8d   :  { %v2992_v46 = vmul.f32 0.03125, %v2990_v43 }
0x1b8e   :  { %v2987_v35 = vpop.xlane.xlu0 %2986 }
0x1b8f   :  { %v2994_v37 = vadd.f32 1e-12, %v2992_v46  ;;  %v2991_v36 = vmul.f32 0.03125, %v2987_v35  ;;  %v3281_v35 = vld [vmem:[%s4840_s16 + $0x18] sm:$0xff] }
0x1b91   :  { %4085 = vrsqrt.f32 %v2994_v37  ;;  %v2993_v38 = vadd.f32 1e-12, %v2991_v36  ;;  %v4208_v37 = vmov 0.0   ;;  %v3280_v36 = vld [vmem:[%s4840_s16 + $0x10] sm:$0xff] }
0x1b92   :  { %3964 = vmatprep.subr.mxu0 %v4208_v37 }
0x1b93   :  { %4087 = vrsqrt.f32 %v2993_v38  ;;  %v3279_v38 = vld [vmem:[%s4840_s16 + $0x8] sm:$0xff] }
0x1b9e   :  { %v4086_v40 = vpop.eup %4085 }
0x1b9f   :  { %v2998_v42 = vmul.f32 %v4086_v40, %v2982_v24  ;;  %v3278_v40 = vld [vmem:[%s4840_s16] sm:$0xff] }
0x1ba0   :  { %v4088_v44 = vpop.eup %4087 }
0x1ba1   :  { %v2997_v45 = vmul.f32 %v4088_v44, %v2981_v26  ;;  %v3006_v47 = vmul.f32 %v3558_v41, %v2998_v42 }
0x1ba3   :  { %v3005_v39 = vmul.f32 %v3558_v41, %v2997_v45  ;;  %v3014_v52 = vadd.f32 %v3559_v48, %v3006_v47 }
0x1ba5   :  { %v3013_v49 = vadd.f32 %v3559_v48, %v3005_v39 }
0x1ba7   :  { %3942 = vmatprep.mubr.msk.f32.mxu0 %vm122_vm0, %v3013_v49 }
0x1ba8   :  { %3943 = vmatmul.mubr.msk.f32.vlgmr.msra.gmra.mxu0 %vm122_vm0, %v3014_v52 }
0x1ba9   :  { %3972 = vmatprep.mubr.msk.f32.mxu0 %vm4209_vm4, %v4208_v37  ;;  %3965 = vmatpush3.msra.mxu0 %v3281_v35 }
0x1baa   :  { %3966 = vmatprep.subr.mxu0 %v4208_v37 }
0x1bab   :  { %3967 = vmatpush3.msra.mxu0 %v3280_v36 }
0x1bac   :  { %3968 = vmatprep.subr.mxu0 %v4208_v37 }
0x1bad   :  { %3969 = vmatpush3.msra.mxu0 %v3279_v38 }
0x1bae   :  { %3970 = vmatprep.subr.mxu0 %v4208_v37 }
0x1baf   :  { %3971 = vmatpush3.msra.mxu0 %v3278_v40 }
0x1bb0   :  { %3975 = vmatprep.subr.mxu0 %v4208_v37 }
0x1c68   :  { %v3944_v1 = vpop.f32.mrf.mxu0 }
0x1c69   :  { %v3106_v2 = vadd.f32 %v3944_v1, %v3565_v0  ;;  %v3366_v1 = vld [vmem:[%s4842_s18 + $0x18] sm:$0xff] }
0x1c6a   :  { %v3100_v3 = vpop.f32.mrf.mxu0 }
0x1c6b   :  { %v3112_v55 = vmul.f32 0.044715, %v3106_v2  ;;  %v3101_v4 = vadd.f32 %v3565_v0, %v3100_v3  ;;  %v3110_v18 = vmul.f32 0.5, %v3106_v2  ;;  %v3364_v3 = vld [vmem:[%s4842_s18 + $0x8] sm:$0xff] }
0x1c6d   :  { %v3114_v5 = vmul.f32 %v3112_v55, %v3106_v2  ;;  %v3111_v7 = vmul.f32 0.044715, %v3101_v4  ;;  %v3109_v17 = vmul.f32 0.5, %v3101_v4  ;;  %v3363_v55 = vld [vmem:[%s4842_s18] sm:$0xff] }
0x1c6f   :  { %v3116_v57 = vmul.f32 %v3114_v5, %v3106_v2  ;;  %v3113_v8 = vmul.f32 %v3111_v7, %v3101_v4 }
0x1c71   :  { %v3118_v9 = vadd.f32 %v3116_v57, %v3106_v2  ;;  %v3115_v10 = vmul.f32 %v3113_v8, %v3101_v4  ;;  %v3365_v2 = vld [vmem:[%s4842_s18 + $0x10] sm:$0xff] }
0x1c73   :  { %v3120_v11 = vmul.f32 0.7978846, %v3118_v9  ;;  %v3117_v12 = vadd.f32 %v3115_v10, %v3101_v4  ;;  %v3584_v4 = vld [vmem:[%s4841_s17] ss:$0 sm:$0xff] }
0x1c74   :  { %v3586_v9 = vld [vmem:[#allocation2] ss:$0 sm:$0xff] }
0x1c75   :  { %4089 = vtanh.f32 %v3120_v11  ;;  %v3119_v13 = vmul.f32 0.7978846, %v3117_v12 }
0x1c77   :  { %4091 = vtanh.f32 %v3119_v13 }
0x1c82   :  { %v4090_v14 = vpop.eup %4089 }
0x1c83   :  { %v3124_v16 = vadd.f32 1.0, %v4090_v14 }
0x1c84   :  { %v4092_v15 = vpop.eup %4091 }
0x1c85   :  { %v3123_v56 = vadd.f32 1.0, %v4092_v15  ;;  %v3126_v6 = vmul.f32 %v3124_v16, %v3110_v18 }
0x1c87   :  { %v3125_v19 = vmul.f32 %v3123_v56, %v3109_v17 }
0x1c89   :  { %3961 = vmatprep.mubr.msk.f32.mxu1 %vm1588_vm3, %v3125_v19 }
0x1c8a   :  { %3962 = vmatmul.mubr.msk.f32.vlgmr.msra.gmra.mxu1 %vm1588_vm3, %v3126_v6 }
0x1d4a   :  { %v3963_v32 = vpop.f32.mrf.mxu1 }
0x1d4b   :  { %v3222_v20 = vadd.f32 %v3963_v32, %v3577_v34 }
0x1d4c   :  { %v3216_v21 = vpop.f32.mrf.mxu1 }
0x1d4d   :  { %v3217_v22 = vadd.f32 %v3577_v34, %v3216_v21  ;;  %v3226_v23 = vadd.f32 %v3222_v20, %v3014_v52 }
0x1d4f   :  { %v3234_v24 = vsel %vm122_vm0, %v3226_v23, 0.0  ;;  %v3225_v25 = vadd.f32 %v3217_v22, %v3013_v49  ;;  %v3582_v49 = vld [vmem:[%s4838_s14 + $0x1] ss:$0 sm:$0xff] }
0x1d50   :  { %3235 = vadd.xlane.f32.xlu0 %v3234_v24 }
0x1d51   :  { %v3231_v26 = vsel %vm122_vm0, %v3225_v25, 0.0 }
0x1d52   :  { %3232 = vadd.xlane.f32.xlu1 %v3231_v26 }
0x1dd9   :  { %v3236_v27 = vpop.xlane.xlu0 %3235 }
0x1dda   :  { %v3238_v28 = vmul.f32 0.03125, %v3236_v27 }
0x1ddb   :  { %v3233_v29 = vpop.xlane.xlu1 %3232 }
0x1ddc   :  { %v3240_v51 = vsub.f32 %v3226_v23, %v3238_v28  ;;  %v3237_v50 = vmul.f32 0.03125, %v3233_v29 }
0x1dde   :  { %v3239_v30 = vsub.f32 %v3225_v25, %v3237_v50  ;;  %v3242_v31 = vmul.f32 %v3240_v51, %v3240_v51 }
0x1de0   :  { %v3246_v33 = vsel %vm122_vm0, %v3242_v31, 0.0  ;;  %v3241_v43 = vmul.f32 %v3239_v30, %v3239_v30 }
0x1de1   :  { %3247 = vadd.xlane.f32.xlu0 %v3246_v33 }
0x1de2   :  { %v3243_v46 = vsel %vm122_vm0, %v3241_v43, 0.0 }
0x1de3   :  { %3244 = vadd.xlane.f32.xlu1 %v3243_v46 }
0x1e6a   :  { %v3248_v41 = vpop.xlane.xlu0 %3247 }
0x1e6b   :  { %v3250_v42 = vmul.f32 0.03125, %v3248_v41 }
0x1e6c   :  { %v3245_v44 = vpop.xlane.xlu1 %3244 }
0x1e6d   :  { %v3252_v45 = vadd.f32 1e-12, %v3250_v42  ;;  %v3249_v47 = vmul.f32 0.03125, %v3245_v44 }
0x1e6f   :  { %4093 = vrsqrt.f32 %v3252_v45  ;;  %v3251_v48 = vadd.f32 1e-12, %v3249_v47 }
0x1e71   :  { %4095 = vrsqrt.f32 %v3251_v48 }
0x1e7c   :  { %v4094_v39 = vpop.eup %4093 }
0x1e7d   :  { %v3256_v52 = vmul.f32 %v4094_v39, %v3240_v51 }
0x1e7e   :  { %v4096_v53 = vpop.eup %4095 }
0x1e7f   :  { %v3255_v58 = vmul.f32 %v4096_v53, %v3239_v30  ;;  %v3264_v59 = vmul.f32 %v3582_v49, %v3256_v52 }
0x1e81   :  { %v3263_v60 = vmul.f32 %v3582_v49, %v3255_v58  ;;  %v3272_v61 = vadd.f32 %v3583_v54, %v3264_v59 }
0x1e83   :  { %v3271_v62 = vadd.f32 %v3583_v54, %v3263_v60  ;;  %v3274_v63 = vrot.slane %v3272_v61, 7 }
0x1e85   :  { %v3277_v0 = vsel %vm3276_vm5, %v3271_v62, %v3274_v63 }
0x1e86   :  { %3973 = vmatmul.mubr.msk.f32.vlgmr.msra.gmra.mxu0 %vm122_vm0, %v3277_v0 }
0x1e87   :  { %3983 = vmatprep.mubr.msk.f32.mxu0 %vm4209_vm4, %v4208_v37  ;;  %3976 = vmatpush3.msra.mxu0 %v3366_v1 }
0x1e88   :  { %3977 = vmatprep.subr.mxu0 %v4208_v37 }
0x1e89   :  { %3978 = vmatpush3.msra.mxu0 %v3365_v2 }
0x1e8a   :  { %3979 = vmatprep.subr.mxu0 %v4208_v37 }
0x1e8b   :  { %3980 = vmatpush3.msra.mxu0 %v3364_v3 }
0x1e8c   :  { %3981 = vmatprep.subr.mxu0 %v4208_v37 }
0x1e8d   :  { %3982 = vmatpush3.msra.mxu0 %v3363_v55 }
0x1f46   :  { %v3358_v5 = vpop.f32.mrf.mxu0 }
0x1f47   :  { %v3359_v7 = vadd.f32 %v3584_v4, %v3358_v5 }
0x1f48   :  { %v3974_v57 = vpop.f32.mrf.mxu0 }
0x1f49   :  { %4097 = vtanh.f32 %v3359_v7 }
0x1f56   :  { %v4098_v8 = vpop.eup %4097 }
0x1f57   :  { %3984 = vmatmul.mubr.msk.f32.vlgmr.msra.gmra.mxu0 %vm122_vm0, %v4098_v8 }
0x2017   :  { %v3443_v10 = vpop.f32.mrf.mxu0 }
0x2018   :  { %v3444_v11 = vadd.f32 %v3586_v9, %v3443_v10 }
0x2019   :  { %v3985_v12 = vpop.f32.mrf.mxu0 }
0x201a   :  { %v3447_v13 = vsub.f32 0.0, %v3444_v11 }
0x201c   :  { %v3448_v14 = vmul.f32 1.442695, %v3447_v13 }
0x201e   :  { %4099 = vpow2.f32 %v3448_v14 }
0x202b   :  { %v4100_v15 = vpop.eup %4099 }
0x202c   :  { %v3450_v16 = vadd.f32 1.0, %v4100_v15 }
0x202e   :  { %4101 = vrcp.f32 %v3450_v16 }
0x203b   :  { %v4102_v17 = vpop.eup %4101 }
0x203c   :  { %3454 = vst.msk [vmem:[%s4844_s20] sm:$0x3] %vm3453_vm6, %v4102_v17 }
0x203d   :  { %3459 = vsyncpa [#allocation4], 1 }
0x203e   :  { %3460 = vsyncpa [#allocation6], 1 }
0x203f   :  { %3461 = vsyncpa [#allocation9], 1 }

</bundles_post_ra>
